<compile_context>
chip_gen: v7x
topology: tpu7x:2x2x1
jax: 0.10.0
libtpu: 0.0.40
codegen_flags: <defaults>
</compile_context>

<pallas_src>
import functools
import math

import jax
import jax.numpy as jnp
from jax.experimental import pallas as pl
from jax.experimental.pallas import tpu as pltpu


def _row(v):
    return v.reshape(1, -1)


def _vmem_limit_bytes():
    """Per-generation VMEM cap: ~3/4 of physical (96 MiB v5e/v6e, 48 MiB v7x)."""
    try:
        cap = int(pltpu.get_tpu_info().vmem_capacity_bytes)
    except Exception:
        cap = 64 * 1024 * 1024
    return int(min(cap * 3 // 4, 100 * 1024 * 1024))


def _pick_batch_tile(b, s, row_target=256, row_cap=2048):
    """Batch tile (divisor of b) aiming for >= row_target rows per matmul while
    keeping >= 2 grid steps when possible (v7x has 2 TensorCores per chip)."""
    divs = [t for t in range(1, b + 1) if b % t == 0 and t * s <= row_cap]
    if not divs:
        return 1
    good = [t for t in divs if t * s >= row_target and b // t >= 2]
    if good:
        return min(good)
    ok = [t for t in divs if b // t >= 2]
    if ok:
        return max(ok)
    return divs[-1]


# ----------------------------- Pallas kernels -----------------------------

def _frontend_kernel(xm_ref, cat_ref, m_ref,
                     wf_ref, cb1_ref, w2cc_ref, cb2cc_ref, bbcc_ref,
                     constb_ref, pos_ref, o_ref, *, d, mxu_dtype):
    """Fused frontend for one batch tile: block-diagonal cont/bin/text
    projection, cont MLP second layer (folded with combining_fc), per-row
    masking, categorical contribution, constant bias and positional encoding."""
    f32 = jnp.float32
    bt, s, kt = xm_ref.shape
    r = bt * s

    xm = xm_ref[...].reshape(r, kt)                               # mxu_dtype
    z = jnp.dot(xm, wf_ref[...], preferred_element_type=f32)      # (r, 3d)

    h = jnp.maximum(z[:, :d] + cb1_ref[...], 0.0)                 # cont hidden
    cont = jnp.dot(h.astype(mxu_dtype), w2cc_ref[...],
                   preferred_element_type=f32) + cb2cc_ref[...]

    m = m_ref[...].reshape(r, 3)                                  # [cont,cat,bin]
    out = (cont * m[:, 0:1]
           + cat_ref[...].reshape(r, d) * m[:, 1:2]
           + (z[:, d:2 * d] + bbcc_ref[...]) * m[:, 2:3]
           + z[:, 2 * d:]
           + constb_ref[...])
    out = out.reshape(bt, s, d) + pos_ref[...]                    # (bt,S,d)+(1,S,d)
    o_ref[...] = out.astype(o_ref.dtype)


def _encoder_layer_kernel(x_ref, bias_ref,
                          wqkv_ref, bqkv_ref, wo_ref, bo_ref,
                          w1_ref, b1_ref, w2_ref, b2_ref,
                          g1_ref, beta1_ref, g2_ref, beta2_ref,
                          o_ref, ctx_ref, *, nhead, scale, eps, mxu_dtype):
    """One fused post-norm TransformerEncoderLayer for a batch tile."""
    f32 = jnp.float32
    bt, s, d = x_ref.shape
    r = bt * s
    hd = d // nhead

    x = x_ref[...].astype(f32).reshape(r, d)
    xb = x.astype(mxu_dtype)                                      # cast once/block

    # fused QKV projection, full-K, full-width output (d x 3d)
    qkv = jnp.dot(xb, wqkv_ref[...], preferred_element_type=f32) + bqkv_ref[...]
    q = qkv[:, :d].reshape(bt, s, d)
    k = qkv[:, d:2 * d].reshape(bt, s, d)
    v = qkv[:, 2 * d:].reshape(bt, s, d)
    bias = bias_ref[...]                                          # (bt, 1, s) f32

    # Per-batch-element, per-head attention.  Head contexts are written into a
    # (bt, s, d) VMEM scratch at lane slices; the output projection is a single
    # full-K matmul after the loop.
    # TODO(synk): for long sequences switch to a flash-style tiled online
    # softmax (kv grid axis) and a fori_loop over heads to bound live ranges.
    for b in range(bt):
        qb = q[b].astype(mxu_dtype)
        kb = k[b].astype(mxu_dtype)
        vb = v[b].astype(mxu_dtype)
        brow = bias[b]                                            # (1, s)
        for h in range(nhead):
            sl = slice(h * hd, (h + 1) * hd)
            sc = jax.lax.dot_general(qb[:, sl], kb[:, sl],
                                     (((1,), (1,)), ((), ())),
                                     preferred_element_type=f32)  # (s, s)
            sc = sc * scale + brow
            sc = sc - jnp.max(sc, axis=-1, keepdims=True)
            p = jnp.exp(sc)
            p = p * pl.reciprocal(jnp.sum(p, axis=-1, keepdims=True), approx=True)
            ctx_ref[b, :, sl] = jnp.dot(p.astype(mxu_dtype), vb[:, sl],
                                        preferred_element_type=f32)

    ctx = ctx_ref[...].reshape(r, d)
    attn = jnp.dot(ctx.astype(mxu_dtype), wo_ref[...],
                   preferred_element_type=f32) + bo_ref[...]

    # residual + LayerNorm1 (post-norm, f32)
    h1 = x + attn
    mu = jnp.mean(h1, axis=-1, keepdims=True)
    var = jnp.mean((h1 - mu) ** 2, axis=-1, keepdims=True)
    h1n = (h1 - mu) * jax.lax.rsqrt(var + eps) * g1_ref[...] + beta1_ref[...]

    # feed-forward + residual + LayerNorm2
    ff = jnp.maximum(jnp.dot(h1n.astype(mxu_dtype), w1_ref[...],
                             preferred_element_type=f32) + b1_ref[...], 0.0)
    h2 = h1n + jnp.dot(ff.astype(mxu_dtype), w2_ref[...],
                       preferred_element_type=f32) + b2_ref[...]
    mu2 = jnp.mean(h2, axis=-1, keepdims=True)
    var2 = jnp.mean((h2 - mu2) ** 2, axis=-1, keepdims=True)
    out = (h2 - mu2) * jax.lax.rsqrt(var2 + eps) * g2_ref[...] + beta2_ref[...]
    o_ref[...] = out.reshape(bt, s, d).astype(o_ref.dtype)


def _head_kernel(x_ref, pw_ref, pb_ref, cw_ref, cb_ref, pooled_ref, logits_ref):
    """pooling_fc followed by classification head, fused."""
    pooled = jnp.dot(x_ref[...], pw_ref[...],
                     preferred_element_type=jnp.float32) + pb_ref[...]
    pooled_ref[...] = pooled.astype(pooled_ref.dtype)
    logits = jnp.dot(pooled, cw_ref[...],
                     preferred_element_type=jnp.float32) + cb_ref[...]
    logits_ref[...] = logits.astype(logits_ref.dtype)


# ----------------------------- kernel wrappers -----------------------------

def _fused_encoder_layer(x, key_bias, lw, *, nhead, bt, vmem_limit, mxu_dtype):
    B, S, d = x.shape
    d_ff = lw['w1'].shape[1]
    io3 = lambda i: (i, 0, 0)
    w2d = lambda i: (0, 0)               # constant index_map -> resident weight

    kernel = functools.partial(_encoder_layer_kernel, nhead=nhead,
                               scale=1.0 / math.sqrt(d // nhead), eps=1e-5,
                               mxu_dtype=mxu_dtype)
    return pl.pallas_call(
        kernel,
        out_shape=jax.ShapeDtypeStruct((B, S, d), x.dtype),
        grid=(B // bt,),
        in_specs=[
            pl.BlockSpec((bt, S, d), io3),           # x
            pl.BlockSpec((bt, 1, S), io3),           # key-padding bias
            pl.BlockSpec((d, 3 * d), w2d), pl.BlockSpec((1, 3 * d), w2d),
            pl.BlockSpec((d, d), w2d), pl.BlockSpec((1, d), w2d),
            pl.BlockSpec((d, d_ff), w2d), pl.BlockSpec((1, d_ff), w2d),
            pl.BlockSpec((d_ff, d), w2d), pl.BlockSpec((1, d), w2d),
            pl.BlockSpec((1, d), w2d), pl.BlockSpec((1, d), w2d),
            pl.BlockSpec((1, d), w2d), pl.BlockSpec((1, d), w2d),
        ],
        out_specs=pl.BlockSpec((bt, S, d), io3),
        scratch_shapes=[pltpu.VMEM((bt, S, d), jnp.float32)],
        compiler_params=pltpu.CompilerParams(
            dimension_semantics=("parallel",),
            vmem_limit_bytes=vmem_limit),
    )(x, key_bias, lw['wqkv'], lw['bqkv'], lw['wo'], lw['bo'],
      lw['w1'], lw['b1'], lw['w2'], lw['b2'],
      lw['g1'], lw['beta1'], lw['g2'], lw['beta2'])


# ----------------------------- parameter init -----------------------------

def _dense(key, fin, fout):
    kw, kb = jax.random.split(key)
    w = jax.random.normal(kw, (fin, fout), jnp.float32) * (1.0 / math.sqrt(fin))
    b = jax.random.normal(kb, (fout,), jnp.float32) * 0.01
    return w, b


def init_params(key, *, emb_shapes, num_cont, num_bin, num_text, d_model,
                nhead, num_layers, dim_ff, num_classes, max_len):
    del nhead  # static config, not stored as a pytree leaf
    keys = iter(jax.random.split(key, 64))
    p = {}
    p['cont_w1'], p['cont_b1'] = _dense(next(keys), num_cont, d_model)
    p['cont_w2'], p['cont_b2'] = _dense(next(keys), d_model, d_model)
    p['cat_emb'] = {}
    for feat, (card, _) in emb_shapes.items():
        tbl = jax.random.normal(next(keys), (card, d_model), jnp.float32) * 0.1
        p['cat_emb'][feat] = tbl.at[0].set(0.0)      # padding_idx=0 -> zero row
    p['text_w'], p['text_b'] = _dense(next(keys), num_text, d_model)
    p['bin_w'], p['bin_b'] = _dense(next(keys), num_bin, d_model)
    total_d = (1 + len(emb_shapes) + 1 + 1) * d_model
    p['comb_w'], p['comb_b'] = _dense(next(keys), total_d, d_model)
    p['pos_embedding'] = (jax.random.normal(next(keys), (1, max_len, d_model),
                                            jnp.float32) * 0.02)
    p['layers'] = []
    for _ in range(num_layers):
        lp = {}
        lp['in_proj_w'], lp['in_proj_b'] = _dense(next(keys), d_model, 3 * d_model)
        lp['out_w'], lp['out_b'] = _dense(next(keys), d_model, d_model)
        lp['ff_w1'], lp['ff_b1'] = _dense(next(keys), d_model, dim_ff)
        lp['ff_w2'], lp['ff_b2'] = _dense(next(keys), dim_ff, d_model)
        lp['ln1_g'] = jnp.ones((d_model,), jnp.float32)
        lp['ln1_b'] = jnp.zeros((d_model,), jnp.float32)
        lp['ln2_g'] = jnp.ones((d_model,), jnp.float32)
        lp['ln2_b'] = jnp.zeros((d_model,), jnp.float32)
        p['layers'].append(lp)
    p['pool_w'], p['pool_b'] = _dense(next(keys), d_model, d_model)
    p['cls_w'], p['cls_b'] = _dense(next(keys), d_model, num_classes)
    return p


# ----------------------------- forward pass -----------------------------

def forward(params, x_cat, x_bin, x_cont, x_text, mask_cat, mask_bin, mask_cont,
            *, nhead, mxu_dtype=jnp.bfloat16):
    """Eval-mode forward.  mxu_dtype controls the MXU input dtype (default bf16
    for the fast path on all generations); accumulation / LN / softmax stay f32."""
    f32 = jnp.float32
    B, S, n_cont = x_cont.shape
    n_bin = x_bin.shape[-1]
    n_text = x_text.shape[-1]
    d = params['pos_embedding'].shape[-1]
    assert d % nhead == 0
    fdt = x_cont.dtype

    bt = _pick_batch_tile(B, S)
    vmem_limit = _vmem_limit_bytes()

    ncat = len(x_cat)
    comb_w = params['comb_w'].astype(f32)
    cc_cont = comb_w[:d]
    cc_cat = comb_w[d:d + ncat * d]
    cc_bin = comb_w[d + ncat * d:2 * d + ncat * d]
    cc_text = comb_w[2 * d + ncat * d:]

    # ---- algebraic folding (per-row masks commute with combining_fc) ----
    cw2cc = params['cont_w2'] @ cc_cont                  # (d, d)
    cb2cc = params['cont_b2'] @ cc_cont                  # (d,)
    bwcc = params['bin_w'] @ cc_bin                      # (n_bin, d)
    bbcc = params['bin_b'] @ cc_bin
    twcc = params['text_w'] @ cc_text                    # (n_text, d)
    const_b = params['text_b'] @ cc_text + params['comb_b']

    # categorical: fold each comb_w block into the embedding table and gather in
    # XLA (data-dependent gather), then sum over features -> (B, S, d).
    cat_proj = jnp.zeros((B, S, d), f32)
    for i, feat in enumerate(x_cat):
        folded_tbl = params['cat_emb'][feat] @ cc_cat[i * d:(i + 1) * d]
        cat_proj = cat_proj + jnp.take(folded_tbl, x_cat[feat], axis=0)

    # block-diagonal stacked frontend weight: one MXU push for cont/bin/text
    kt = n_cont + n_bin + n_text
    w_front = jnp.zeros((kt, 3 * d), f32)
    w_front = w_front.at[:n_cont, :d].set(params['cont_w1'])
    w_front = w_front.at[n_cont:n_cont + n_bin, d:2 * d].set(bwcc)
    w_front = w_front.at[n_cont + n_bin:, 2 * d:].set(twcc)

    x_merged = jnp.concatenate([x_cont, x_bin, x_text], axis=-1).astype(mxu_dtype)
    masks3 = jnp.concatenate([mask_cont.astype(f32), mask_cat.astype(f32),
                              mask_bin.astype(f32)], axis=-1)          # (B,S,3)
    pos = params['pos_embedding'][:, :S, :].astype(f32)

    io3 = lambda i: (i, 0, 0)
    w2d = lambda i: (0, 0)

    x = pl.pallas_call(
        functools.partial(_frontend_kernel, d=d, mxu_dtype=mxu_dtype),
        out_shape=jax.ShapeDtypeStruct((B, S, d), fdt),
        grid=(B // bt,),
        in_specs=[
            pl.BlockSpec((bt, S, kt), io3),
            pl.BlockSpec((bt, S, d), io3),
            pl.BlockSpec((bt, S, 3), io3),
            pl.BlockSpec((kt, 3 * d), w2d),
            pl.BlockSpec((1, d), w2d),
            pl.BlockSpec((d, d), w2d),
            pl.BlockSpec((1, d), w2d),
            pl.BlockSpec((1, d), w2d),
            pl.BlockSpec((1, d), w2d),
            pl.BlockSpec((1, S, d), lambda i: (0, 0, 0)),
        ],
        out_specs=pl.BlockSpec((bt, S, d), io3),
        compiler_params=pltpu.CompilerParams(
            dimension_semantics=("parallel",),
            vmem_limit_bytes=vmem_limit),
    )(x_merged, cat_proj, masks3,
      w_front.astype(mxu_dtype), _row(params['cont_b1']),
      cw2cc.astype(mxu_dtype), _row(cb2cc), _row(bbcc), _row(const_b), pos)
    # TODO(synk): training-only gaussian input noise (noise_std) and dropout are
    # omitted (eval-mode semantics of the PyTorch module).

    combined = mask_cont[..., 0] & mask_bin[..., 0] & mask_cat[..., 0]   # (B,S)
    # src_key_padding_mask=~combined -> additive -1e9 bias on padded keys (f32).
    key_bias = jnp.where(combined, 0.0, -1e9).astype(f32)[:, None, :]    # (B,1,S)

    for lp in params['layers']:
        lw = dict(
            wqkv=lp['in_proj_w'].astype(mxu_dtype), bqkv=_row(lp['in_proj_b']),
            wo=lp['out_w'].astype(mxu_dtype), bo=_row(lp['out_b']),
            w1=lp['ff_w1'].astype(mxu_dtype), b1=_row(lp['ff_b1']),
            w2=lp['ff_w2'].astype(mxu_dtype), b2=_row(lp['ff_b2']),
            g1=_row(lp['ln1_g']), beta1=_row(lp['ln1_b']),
            g2=_row(lp['ln2_g']), beta2=_row(lp['ln2_b']))
        x = _fused_encoder_layer(x, key_bias, lw, nhead=nhead, bt=bt,
                                 vmem_limit=vmem_limit, mxu_dtype=mxu_dtype)

    # Last-valid-token pooling (fully padded rows clamp to index 0 and stay
    # finite; PyTorch would NaN in that degenerate case).
    last_idx = jnp.maximum(jnp.sum(combined.astype(jnp.int32), axis=1) - 1, 0)
    pooled_in = x[jnp.arange(B), last_idx]                               # (B, d)
    # TODO(synk): this B-row gather could be folded into the head kernel via
    # PrefetchScalarGridSpec; kept in XLA since it touches only B rows.

    num_classes = params['cls_w'].shape[1]
    pooled, logits = pl.pallas_call(
        _head_kernel,
        out_shape=(jax.ShapeDtypeStruct((B, d), fdt),
                   jax.ShapeDtypeStruct((B, num_classes), fdt)),
        compiler_params=pltpu.CompilerParams(vmem_limit_bytes=vmem_limit),
    )(pooled_in, params['pool_w'], _row(params['pool_b']),
      params['cls_w'], _row(params['cls_b']))
    return pooled, logits


# ----------------------------- demo / smoke test -----------------------------

if __name__ == "__main__":
    key = jax.random.PRNGKey(0)
    B, S = 2, 8
    d_model, nhead, num_layers, dim_ff = 32, 4, 2, 64
    num_cont, num_bin, num_text = 5, 3, 6
    emb_shapes = {'cat_a': (11, d_model), 'cat_b': (7, d_model)}
    num_classes, max_len = 3, 251

    kparams, kdata = jax.random.split(key)
    params = init_params(kparams, emb_shapes=emb_shapes, num_cont=num_cont,
                         num_bin=num_bin, num_text=num_text, d_model=d_model,
                         nhead=nhead, num_layers=num_layers, dim_ff=dim_ff,
                         num_classes=num_classes, max_len=max_len)

    dk = jax.random.split(kdata, 6)
    x_cont = jax.random.normal(dk[0], (B, S, num_cont), jnp.float32)
    x_bin = (jax.random.uniform(dk[1], (B, S, num_bin)) > 0.5).astype(jnp.float32)
    x_text = jax.random.normal(dk[2], (B, S, num_text), jnp.float32)
    x_cat = {
        'cat_a': jax.random.randint(dk[3], (B, S), 1, emb_shapes['cat_a'][0]),
        'cat_b': jax.random.randint(dk[4], (B, S), 1, emb_shapes['cat_b'][0]),
    }
    lengths = jnp.array([8, 5], dtype=jnp.int32)
    valid = (jnp.arange(S)[None, :] < lengths[:, None])[..., None]   # (B,S,1) bool
    mask_cat = mask_bin = mask_cont = valid

    fwd = jax.jit(functools.partial(forward, nhead=nhead))
    pooled, logits = fwd(params, x_cat, x_bin, x_cont, x_text,
                         mask_cat, mask_bin, mask_cont)
    jax.block_until_ready((pooled, logits))

    assert pooled.shape == (B, d_model), pooled.shape
    assert logits.shape == (B, num_classes), logits.shape
    assert bool(jnp.all(jnp.isfinite(pooled))) and bool(jnp.all(jnp.isfinite(logits)))
    print("KERNEL_OK")
</pallas_src>

<mosaic_0001>
module attributes {stable_mosaic.version = 11 : i64} {
  func.func @_frontend_kernel(%arg0: i32, %arg1: memref<1x8x14xbf16, #tpu.memory_space<vmem>>, %arg2: memref<1x8x32xf32, #tpu.memory_space<vmem>>, %arg3: memref<1x8x3xf32, #tpu.memory_space<vmem>>, %arg4: memref<14x96xbf16, #tpu.memory_space<vmem>>, %arg5: memref<1x32xf32, #tpu.memory_space<vmem>>, %arg6: memref<32x32xbf16, #tpu.memory_space<vmem>>, %arg7: memref<1x32xf32, #tpu.memory_space<vmem>>, %arg8: memref<1x32xf32, #tpu.memory_space<vmem>>, %arg9: memref<1x32xf32, #tpu.memory_space<vmem>>, %arg10: memref<1x8x32xf32, #tpu.memory_space<vmem>>, %arg11: memref<1x8x32xf32, #tpu.memory_space<vmem>>) attributes {dimension_semantics = [#tpu.dimension_semantics<parallel>], iteration_bounds = array<i64: 2>, scalar_prefetch = 0 : i64, scratch_operands = 0 : i64, tpu.core_type = #tpu.core_type<tc>, window_params = [{transform_indices = @transform_0, window_bounds = array<i64: 1, 8, 14>}, {transform_indices = @transform_1, window_bounds = array<i64: 1, 8, 32>}, {transform_indices = @transform_2, window_bounds = array<i64: 1, 8, 3>}, {pipeline_mode = #tpu.pipeline_mode<synchronous>, transform_indices = @transform_3, window_bounds = array<i64: 14, 96>}, {pipeline_mode = #tpu.pipeline_mode<synchronous>, transform_indices = @transform_4, window_bounds = array<i64: 1, 32>}, {pipeline_mode = #tpu.pipeline_mode<synchronous>, transform_indices = @transform_5, window_bounds = array<i64: 32, 32>}, {pipeline_mode = #tpu.pipeline_mode<synchronous>, transform_indices = @transform_6, window_bounds = array<i64: 1, 32>}, {pipeline_mode = #tpu.pipeline_mode<synchronous>, transform_indices = @transform_7, window_bounds = array<i64: 1, 32>}, {pipeline_mode = #tpu.pipeline_mode<synchronous>, transform_indices = @transform_8, window_bounds = array<i64: 1, 32>}, {pipeline_mode = #tpu.pipeline_mode<synchronous>, transform_indices = @transform_9, window_bounds = array<i64: 1, 8, 32>}, {transform_indices = @transform_10, window_bounds = array<i64: 1, 8, 32>}]} {
    %c0 = arith.constant 0 : index
    %c0_0 = arith.constant 0 : index
    %c0_1 = arith.constant 0 : index
    %0 = vector.load %arg1[%c0, %c0_0, %c0_1] : memref<1x8x14xbf16, #tpu.memory_space<vmem>>, vector<1x8x14xbf16>
    %1 = vector.shape_cast %0 : vector<1x8x14xbf16> to vector<8x14xbf16>
    %c0_2 = arith.constant 0 : index
    %c0_3 = arith.constant 0 : index
    %2 = vector.load %arg4[%c0_2, %c0_3] : memref<14x96xbf16, #tpu.memory_space<vmem>>, vector<14x96xbf16>
    %cst = arith.constant dense<0.000000e+00> : vector<8x96xf32>
    %3 = tpu.matmul %1, %2, %cst {dimension_numbers = #tpu.dot_dimension_numbers<[1], [0], [0], [1], [0, 0, 1, 1], [], []>} : vector<8x14xbf16>, vector<14x96xbf16>, vector<8x96xf32> -> vector<8x96xf32>
    %4 = vector.extract_strided_slice %3 {offsets = [0, 0], sizes = [8, 32], strides = [1, 1]} : vector<8x96xf32> to vector<8x32xf32>
    %c0_4 = arith.constant 0 : index
    %c0_5 = arith.constant 0 : index
    %5 = vector.load %arg5[%c0_4, %c0_5] : memref<1x32xf32, #tpu.memory_space<vmem>>, vector<1x32xf32>
    %6 = vector.broadcast %5 : vector<1x32xf32> to vector<8x32xf32>
    %7 = arith.addf %4, %6 : vector<8x32xf32>
    %cst_6 = arith.constant 0.000000e+00 : f32
    %8 = vector.broadcast %cst_6 : f32 to vector<8x32xf32>
    %9 = arith.maximumf %7, %8 : vector<8x32xf32>
    %10 = arith.truncf %9 : vector<8x32xf32> to vector<8x32xbf16>
    %c0_7 = arith.constant 0 : index
    %c0_8 = arith.constant 0 : index
    %11 = vector.load %arg6[%c0_7, %c0_8] : memref<32x32xbf16, #tpu.memory_space<vmem>>, vector<32x32xbf16>
    %cst_9 = arith.constant dense<0.000000e+00> : vector<8x32xf32>
    %12 = tpu.matmul %10, %11, %cst_9 {dimension_numbers = #tpu.dot_dimension_numbers<[1], [0], [0], [1], [0, 0, 1, 1], [], []>} : vector<8x32xbf16>, vector<32x32xbf16>, vector<8x32xf32> -> vector<8x32xf32>
    %c0_10 = arith.constant 0 : index
    %c0_11 = arith.constant 0 : index
    %13 = vector.load %arg7[%c0_10, %c0_11] : memref<1x32xf32, #tpu.memory_space<vmem>>, vector<1x32xf32>
    %14 = vector.broadcast %13 : vector<1x32xf32> to vector<8x32xf32>
    %15 = arith.addf %12, %14 : vector<8x32xf32>
    %c0_12 = arith.constant 0 : index
    %c0_13 = arith.constant 0 : index
    %c0_14 = arith.constant 0 : index
    %16 = vector.load %arg3[%c0_12, %c0_13, %c0_14] : memref<1x8x3xf32, #tpu.memory_space<vmem>>, vector<1x8x3xf32>
    %17 = vector.shape_cast %16 : vector<1x8x3xf32> to vector<8x3xf32>
    %18 = vector.extract_strided_slice %17 {offsets = [0, 0], sizes = [8, 1], strides = [1, 1]} : vector<8x3xf32> to vector<8x1xf32>
    %19 = vector.broadcast %18 : vector<8x1xf32> to vector<8x32xf32>
    %20 = arith.mulf %15, %19 : vector<8x32xf32>
    %c0_15 = arith.constant 0 : index
    %c0_16 = arith.constant 0 : index
    %c0_17 = arith.constant 0 : index
    %21 = vector.load %arg2[%c0_15, %c0_16, %c0_17] : memref<1x8x32xf32, #tpu.memory_space<vmem>>, vector<1x8x32xf32>
    %22 = vector.shape_cast %21 : vector<1x8x32xf32> to vector<8x32xf32>
    %23 = vector.extract_strided_slice %17 {offsets = [0, 1], sizes = [8, 1], strides = [1, 1]} : vector<8x3xf32> to vector<8x1xf32>
    %24 = vector.broadcast %23 : vector<8x1xf32> to vector<8x32xf32>
    %25 = arith.mulf %22, %24 : vector<8x32xf32>
    %26 = arith.addf %20, %25 : vector<8x32xf32>
    %27 = vector.extract_strided_slice %3 {offsets = [0, 32], sizes = [8, 32], strides = [1, 1]} : vector<8x96xf32> to vector<8x32xf32>
    %c0_18 = arith.constant 0 : index
    %c0_19 = arith.constant 0 : index
    %28 = vector.load %arg8[%c0_18, %c0_19] : memref<1x32xf32, #tpu.memory_space<vmem>>, vector<1x32xf32>
    %29 = vector.broadcast %28 : vector<1x32xf32> to vector<8x32xf32>
    %30 = arith.addf %27, %29 : vector<8x32xf32>
    %31 = vector.extract_strided_slice %17 {offsets = [0, 2], sizes = [8, 1], strides = [1, 1]} : vector<8x3xf32> to vector<8x1xf32>
    %32 = vector.broadcast %31 : vector<8x1xf32> to vector<8x32xf32>
    %33 = arith.mulf %30, %32 : vector<8x32xf32>
    %34 = arith.addf %26, %33 : vector<8x32xf32>
    %35 = vector.extract_strided_slice %3 {offsets = [0, 64], sizes = [8, 32], strides = [1, 1]} : vector<8x96xf32> to vector<8x32xf32>
    %36 = arith.addf %34, %35 : vector<8x32xf32>
    %c0_20 = arith.constant 0 : index
    %c0_21 = arith.constant 0 : index
    %37 = vector.load %arg9[%c0_20, %c0_21] : memref<1x32xf32, #tpu.memory_space<vmem>>, vector<1x32xf32>
    %38 = vector.broadcast %37 : vector<1x32xf32> to vector<8x32xf32>
    %39 = arith.addf %36, %38 : vector<8x32xf32>
    %40 = vector.shape_cast %39 : vector<8x32xf32> to vector<1x8x32xf32>
    %c0_22 = arith.constant 0 : index
    %c0_23 = arith.constant 0 : index
    %c0_24 = arith.constant 0 : index
    %41 = vector.load %arg10[%c0_22, %c0_23, %c0_24] : memref<1x8x32xf32, #tpu.memory_space<vmem>>, vector<1x8x32xf32>
    %42 = arith.addf %40, %41 : vector<1x8x32xf32>
    %c0_25 = arith.constant 0 : index
    %c0_26 = arith.constant 0 : index
    %c0_27 = arith.constant 0 : index
    %43 = vector.load %arg11[%c0_25, %c0_26, %c0_27] : memref<1x8x32xf32, #tpu.memory_space<vmem>>, vector<1x8x32xf32>
    tpu.vector_store %arg11[%c0_25, %c0_26, %c0_27], %42 {strides = array<i32>} : memref<1x8x32xf32, #tpu.memory_space<vmem>>, vector<1x8x32xf32>,
    return
  }
  func.func @transform_0(%arg0: i32) -> (i32, i32, i32) {
    %c0_i32 = arith.constant 0 : i32
    %c0_i32_0 = arith.constant 0 : i32
    %c0_i32_1 = arith.constant 0 : i32
    return %arg0, %c0_i32, %c0_i32_0 : i32, i32, i32
  }
  func.func @transform_1(%arg0: i32) -> (i32, i32, i32) {
    %c0_i32 = arith.constant 0 : i32
    %c0_i32_0 = arith.constant 0 : i32
    %c0_i32_1 = arith.constant 0 : i32
    return %arg0, %c0_i32, %c0_i32_0 : i32, i32, i32
  }
  func.func @transform_2(%arg0: i32) -> (i32, i32, i32) {
    %c0_i32 = arith.constant 0 : i32
    %c0_i32_0 = arith.constant 0 : i32
    %c0_i32_1 = arith.constant 0 : i32
    return %arg0, %c0_i32, %c0_i32_0 : i32, i32, i32
  }
  func.func @transform_3(%arg0: i32) -> (i32, i32) {
    %c0_i32 = arith.constant 0 : i32
    %c0_i32_0 = arith.constant 0 : i32
    %c0_i32_1 = arith.constant 0 : i32
    return %c0_i32, %c0_i32_0 : i32, i32
  }
  func.func @transform_4(%arg0: i32) -> (i32, i32) {
    %c0_i32 = arith.constant 0 : i32
    %c0_i32_0 = arith.constant 0 : i32
    %c0_i32_1 = arith.constant 0 : i32
    return %c0_i32, %c0_i32_0 : i32, i32
  }
  func.func @transform_5(%arg0: i32) -> (i32, i32) {
    %c0_i32 = arith.constant 0 : i32
    %c0_i32_0 = arith.constant 0 : i32
    %c0_i32_1 = arith.constant 0 : i32
    return %c0_i32, %c0_i32_0 : i32, i32
  }
  func.func @transform_6(%arg0: i32) -> (i32, i32) {
    %c0_i32 = arith.constant 0 : i32
    %c0_i32_0 = arith.constant 0 : i32
    %c0_i32_1 = arith.constant 0 : i32
    return %c0_i32, %c0_i32_0 : i32, i32
  }
  func.func @transform_7(%arg0: i32) -> (i32, i32) {
    %c0_i32 = arith.constant 0 : i32
    %c0_i32_0 = arith.constant 0 : i32
    %c0_i32_1 = arith.constant 0 : i32
    return %c0_i32, %c0_i32_0 : i32, i32
  }
  func.func @transform_8(%arg0: i32) -> (i32, i32) {
    %c0_i32 = arith.constant 0 : i32
    %c0_i32_0 = arith.constant 0 : i32
    %c0_i32_1 = arith.constant 0 : i32
    return %c0_i32, %c0_i32_0 : i32, i32
  }
  func.func @transform_9(%arg0: i32) -> (i32, i32, i32) {
    %c0_i32 = arith.constant 0 : i32
    %c0_i32_0 = arith.constant 0 : i32
    %c0_i32_1 = arith.constant 0 : i32
    %c0_i32_2 = arith.constant 0 : i32
    return %c0_i32, %c0_i32_0, %c0_i32_1 : i32, i32, i32
  }
  func.func @transform_10(%arg0: i32) -> (i32, i32, i32) {
    %c0_i32 = arith.constant 0 : i32
    %c0_i32_0 = arith.constant 0 : i32
    %c0_i32_1 = arith.constant 0 : i32
    return %arg0, %c0_i32, %c0_i32_0 : i32, i32, i32
  }
}

module attributes {stable_mosaic.version = 11 : i64} {
  func.func @_encoder_layer_kernel(%arg0: i32, %arg1: memref<1x8x32xf32, #tpu.memory_space<vmem>>, %arg2: memref<1x1x8xf32, #tpu.memory_space<vmem>>, %arg3: memref<32x96xbf16, #tpu.memory_space<vmem>>, %arg4: memref<1x96xf32, #tpu.memory_space<vmem>>, %arg5: memref<32x32xbf16, #tpu.memory_space<vmem>>, %arg6: memref<1x32xf32, #tpu.memory_space<vmem>>, %arg7: memref<32x64xbf16, #tpu.memory_space<vmem>>, %arg8: memref<1x64xf32, #tpu.memory_space<vmem>>, %arg9: memref<64x32xbf16, #tpu.memory_space<vmem>>, %arg10: memref<1x32xf32, #tpu.memory_space<vmem>>, %arg11: memref<1x32xf32, #tpu.memory_space<vmem>>, %arg12: memref<1x32xf32, #tpu.memory_space<vmem>>, %arg13: memref<1x32xf32, #tpu.memory_space<vmem>>, %arg14: memref<1x32xf32, #tpu.memory_space<vmem>>, %arg15: memref<1x8x32xf32, #tpu.memory_space<vmem>>, %arg16: memref<1x8x32xf32, #tpu.memory_space<vmem>>) attributes {dimension_semantics = [#tpu.dimension_semantics<parallel>], iteration_bounds = array<i64: 2>, scalar_prefetch = 0 : i64, scratch_operands = 1 : i64, tpu.core_type = #tpu.core_type<tc>, window_params = [{transform_indices = @transform_0, window_bounds = array<i64: 1, 8, 32>}, {transform_indices = @transform_1, window_bounds = array<i64: 1, 1, 8>}, {pipeline_mode = #tpu.pipeline_mode<synchronous>, transform_indices = @transform_2, window_bounds = array<i64: 32, 96>}, {pipeline_mode = #tpu.pipeline_mode<synchronous>, transform_indices = @transform_3, window_bounds = array<i64: 1, 96>}, {pipeline_mode = #tpu.pipeline_mode<synchronous>, transform_indices = @transform_4, window_bounds = array<i64: 32, 32>}, {pipeline_mode = #tpu.pipeline_mode<synchronous>, transform_indices = @transform_5, window_bounds = array<i64: 1, 32>}, {pipeline_mode = #tpu.pipeline_mode<synchronous>, transform_indices = @transform_6, window_bounds = array<i64: 32, 64>}, {pipeline_mode = #tpu.pipeline_mode<synchronous>, transform_indices = @transform_7, window_bounds = array<i64: 1, 64>}, {pipeline_mode = #tpu.pipeline_mode<synchronous>, transform_indices = @transform_8, window_bounds = array<i64: 64, 32>}, {pipeline_mode = #tpu.pipeline_mode<synchronous>, transform_indices = @transform_9, window_bounds = array<i64: 1, 32>}, {pipeline_mode = #tpu.pipeline_mode<synchronous>, transform_indices = @transform_10, window_bounds = array<i64: 1, 32>}, {pipeline_mode = #tpu.pipeline_mode<synchronous>, transform_indices = @transform_11, window_bounds = array<i64: 1, 32>}, {pipeline_mode = #tpu.pipeline_mode<synchronous>, transform_indices = @transform_12, window_bounds = array<i64: 1, 32>}, {pipeline_mode = #tpu.pipeline_mode<synchronous>, transform_indices = @transform_13, window_bounds = array<i64: 1, 32>}, {transform_indices = @transform_14, window_bounds = array<i64: 1, 8, 32>}]} {
    %c0 = arith.constant 0 : index
    %c0_0 = arith.constant 0 : index
    %c0_1 = arith.constant 0 : index
    %0 = vector.load %arg1[%c0, %c0_0, %c0_1] : memref<1x8x32xf32, #tpu.memory_space<vmem>>, vector<1x8x32xf32>
    %1 = vector.shape_cast %0 : vector<1x8x32xf32> to vector<8x32xf32>
    %2 = arith.truncf %1 : vector<8x32xf32> to vector<8x32xbf16>
    %c0_2 = arith.constant 0 : index
    %c0_3 = arith.constant 0 : index
    %3 = vector.load %arg3[%c0_2, %c0_3] : memref<32x96xbf16, #tpu.memory_space<vmem>>, vector<32x96xbf16>
    %cst = arith.constant dense<0.000000e+00> : vector<8x96xf32>
    %4 = tpu.matmul %2, %3, %cst {dimension_numbers = #tpu.dot_dimension_numbers<[1], [0], [0], [1], [0, 0, 1, 1], [], []>} : vector<8x32xbf16>, vector<32x96xbf16>, vector<8x96xf32> -> vector<8x96xf32>
    %c0_4 = arith.constant 0 : index
    %c0_5 = arith.constant 0 : index
    %5 = vector.load %arg4[%c0_4, %c0_5] : memref<1x96xf32, #tpu.memory_space<vmem>>, vector<1x96xf32>
    %6 = vector.broadcast %5 : vector<1x96xf32> to vector<8x96xf32>
    %7 = arith.addf %4, %6 : vector<8x96xf32>
    %8 = vector.extract_strided_slice %7 {offsets = [0, 0], sizes = [8, 32], strides = [1, 1]} : vector<8x96xf32> to vector<8x32xf32>
    %9 = vector.shape_cast %8 : vector<8x32xf32> to vector<1x8x32xf32>
    %10 = vector.extract_strided_slice %7 {offsets = [0, 32], sizes = [8, 32], strides = [1, 1]} : vector<8x96xf32> to vector<8x32xf32>
    %11 = vector.shape_cast %10 : vector<8x32xf32> to vector<1x8x32xf32>
    %12 = vector.extract_strided_slice %7 {offsets = [0, 64], sizes = [8, 32], strides = [1, 1]} : vector<8x96xf32> to vector<8x32xf32>
    %13 = vector.shape_cast %12 : vector<8x32xf32> to vector<1x8x32xf32>
    %c0_6 = arith.constant 0 : index
    %c0_7 = arith.constant 0 : index
    %c0_8 = arith.constant 0 : index
    %14 = vector.load %arg2[%c0_6, %c0_7, %c0_8] : memref<1x1x8xf32, #tpu.memory_space<vmem>>, vector<1x1x8xf32>
    %15 = vector.shape_cast %9 : vector<1x8x32xf32> to vector<8x32xf32>
    %16 = arith.truncf %15 : vector<8x32xf32> to vector<8x32xbf16>
    %17 = vector.shape_cast %11 : vector<1x8x32xf32> to vector<8x32xf32>
    %18 = arith.truncf %17 : vector<8x32xf32> to vector<8x32xbf16>
    %19 = vector.shape_cast %13 : vector<1x8x32xf32> to vector<8x32xf32>
    %20 = arith.truncf %19 : vector<8x32xf32> to vector<8x32xbf16>
    %21 = vector.shape_cast %14 : vector<1x1x8xf32> to vector<1x8xf32>
    %22 = vector.extract_strided_slice %16 {offsets = [0, 0], sizes = [8, 8], strides = [1, 1]} : vector<8x32xbf16> to vector<8x8xbf16>
    %23 = vector.extract_strided_slice %18 {offsets = [0, 0], sizes = [8, 8], strides = [1, 1]} : vector<8x32xbf16> to vector<8x8xbf16>
    %cst_9 = arith.constant dense<0.000000e+00> : vector<8x8xf32>
    %24 = tpu.matmul %22, %23, %cst_9 {dimension_numbers = #tpu.dot_dimension_numbers<[1], [1], [0], [0], [0, 0, 1, 0], [], []>} : vector<8x8xbf16>, vector<8x8xbf16>, vector<8x8xf32> -> vector<8x8xf32>
    %cst_10 = arith.constant 0.353553385 : f32
    %25 = vector.broadcast %cst_10 : f32 to vector<8x8xf32>
    %26 = arith.mulf %24, %25 : vector<8x8xf32>
    %27 = vector.broadcast %21 : vector<1x8xf32> to vector<8x8xf32>
    %28 = arith.addf %26, %27 : vector<8x8xf32>
    %cst_11 = arith.constant dense<0xFF800000> : vector<8xf32>
    %29 = vector.multi_reduction <maximumf>, %28, %cst_11 [1] : vector<8x8xf32> to vector<8xf32>
    %30 = vector.shape_cast %29 : vector<8xf32> to vector<8x1xf32>
    %31 = vector.broadcast %30 : vector<8x1xf32> to vector<8x8xf32>
    %32 = arith.subf %28, %31 : vector<8x8xf32>
    %33 = math.exp %32 : vector<8x8xf32>
    %cst_12 = arith.constant dense<0.000000e+00> : vector<8xf32>
    %34 = vector.multi_reduction <add>, %33, %cst_12 [1] : vector<8x8xf32> to vector<8xf32>
    %35 = vector.shape_cast %34 : vector<8xf32> to vector<8x1xf32>
    %36 = tpu.reciprocal %35 {approx = true} : vector<8x1xf32> -> vector<8x1xf32>
    %37 = vector.broadcast %36 : vector<8x1xf32> to vector<8x8xf32>
    %38 = arith.mulf %33, %37 : vector<8x8xf32>
    %39 = arith.truncf %38 : vector<8x8xf32> to vector<8x8xbf16>
    %40 = vector.extract_strided_slice %20 {offsets = [0, 0], sizes = [8, 8], strides = [1, 1]} : vector<8x32xbf16> to vector<8x8xbf16>
    %cst_13 = arith.constant dense<0.000000e+00> : vector<8x8xf32>
    %41 = tpu.matmul %39, %40, %cst_13 {dimension_numbers = #tpu.dot_dimension_numbers<[1], [0], [0], [1], [0, 0, 1, 1], [], []>} : vector<8x8xbf16>, vector<8x8xbf16>, vector<8x8xf32> -> vector<8x8xf32>
    %c0_14 = arith.constant 0 : index
    %c0_15 = arith.constant 0 : index
    %c0_16 = arith.constant 0 : index
    %42 = vector.load %arg16[%c0_14, %c0_15, %c0_16] : memref<1x8x32xf32, #tpu.memory_space<vmem>>, vector<1x8x8xf32>
    %43 = vector.shape_cast %42 : vector<1x8x8xf32> to vector<8x8xf32>
    %44 = vector.shape_cast %41 : vector<8x8xf32> to vector<1x8x8xf32>
    tpu.vector_store %arg16[%c0_14, %c0_15, %c0_16], %44 {strides = array<i32>} : memref<1x8x32xf32, #tpu.memory_space<vmem>>, vector<1x8x8xf32>,
    %45 = vector.extract_strided_slice %16 {offsets = [0, 8], sizes = [8, 8], strides = [1, 1]} : vector<8x32xbf16> to vector<8x8xbf16>
    %46 = vector.extract_strided_slice %18 {offsets = [0, 8], sizes = [8, 8], strides = [1, 1]} : vector<8x32xbf16> to vector<8x8xbf16>
    %cst_17 = arith.constant dense<0.000000e+00> : vector<8x8xf32>
    %47 = tpu.matmul %45, %46, %cst_17 {dimension_numbers = #tpu.dot_dimension_numbers<[1], [1], [0], [0], [0, 0, 1, 0], [], []>} : vector<8x8xbf16>, vector<8x8xbf16>, vector<8x8xf32> -> vector<8x8xf32>
    %cst_18 = arith.constant 0.353553385 : f32
    %48 = vector.broadcast %cst_18 : f32 to vector<8x8xf32>
    %49 = arith.mulf %47, %48 : vector<8x8xf32>
    %50 = vector.broadcast %21 : vector<1x8xf32> to vector<8x8xf32>
    %51 = arith.addf %49, %50 : vector<8x8xf32>
    %cst_19 = arith.constant dense<0xFF800000> : vector<8xf32>
    %52 = vector.multi_reduction <maximumf>, %51, %cst_19 [1] : vector<8x8xf32> to vector<8xf32>
    %53 = vector.shape_cast %52 : vector<8xf32> to vector<8x1xf32>
    %54 = vector.broadcast %53 : vector<8x1xf32> to vector<8x8xf32>
    %55 = arith.subf %51, %54 : vector<8x8xf32>
    %56 = math.exp %55 : vector<8x8xf32>
    %cst_20 = arith.constant dense<0.000000e+00> : vector<8xf32>
    %57 = vector.multi_reduction <add>, %56, %cst_20 [1] : vector<8x8xf32> to vector<8xf32>
    %58 = vector.shape_cast %57 : vector<8xf32> to vector<8x1xf32>
    %59 = tpu.reciprocal %58 {approx = true} : vector<8x1xf32> -> vector<8x1xf32>
    %60 = vector.broadcast %59 : vector<8x1xf32> to vector<8x8xf32>
    %61 = arith.mulf %56, %60 : vector<8x8xf32>
    %62 = arith.truncf %61 : vector<8x8xf32> to vector<8x8xbf16>
    %63 = vector.extract_strided_slice %20 {offsets = [0, 8], sizes = [8, 8], strides = [1, 1]} : vector<8x32xbf16> to vector<8x8xbf16>
    %cst_21 = arith.constant dense<0.000000e+00> : vector<8x8xf32>
    %64 = tpu.matmul %62, %63, %cst_21 {dimension_numbers = #tpu.dot_dimension_numbers<[1], [0], [0], [1], [0, 0, 1, 1], [], []>} : vector<8x8xbf16>, vector<8x8xbf16>, vector<8x8xf32> -> vector<8x8xf32>
    %c0_22 = arith.constant 0 : index
    %c0_23 = arith.constant 0 : index
    %c8 = arith.constant 8 : index
    %65 = vector.load %arg16[%c0_22, %c0_23, %c8] : memref<1x8x32xf32, #tpu.memory_space<vmem>>, vector<1x8x8xf32>
    %66 = vector.shape_cast %65 : vector<1x8x8xf32> to vector<8x8xf32>
    %67 = vector.shape_cast %64 : vector<8x8xf32> to vector<1x8x8xf32>
    tpu.vector_store %arg16[%c0_22, %c0_23, %c8], %67 {strides = array<i32>} : memref<1x8x32xf32, #tpu.memory_space<vmem>>, vector<1x8x8xf32>,
    %68 = vector.extract_strided_slice %16 {offsets = [0, 16], sizes = [8, 8], strides = [1, 1]} : vector<8x32xbf16> to vector<8x8xbf16>
    %69 = vector.extract_strided_slice %18 {offsets = [0, 16], sizes = [8, 8], strides = [1, 1]} : vector<8x32xbf16> to vector<8x8xbf16>
    %cst_24 = arith.constant dense<0.000000e+00> : vector<8x8xf32>
    %70 = tpu.matmul %68, %69, %cst_24 {dimension_numbers = #tpu.dot_dimension_numbers<[1], [1], [0], [0], [0, 0, 1, 0], [], []>} : vector<8x8xbf16>, vector<8x8xbf16>, vector<8x8xf32> -> vector<8x8xf32>
    %cst_25 = arith.constant 0.353553385 : f32
    %71 = vector.broadcast %cst_25 : f32 to vector<8x8xf32>
    %72 = arith.mulf %70, %71 : vector<8x8xf32>
    %73 = vector.broadcast %21 : vector<1x8xf32> to vector<8x8xf32>
    %74 = arith.addf %72, %73 : vector<8x8xf32>
    %cst_26 = arith.constant dense<0xFF800000> : vector<8xf32>
    %75 = vector.multi_reduction <maximumf>, %74, %cst_26 [1] : vector<8x8xf32> to vector<8xf32>
    %76 = vector.shape_cast %75 : vector<8xf32> to vector<8x1xf32>
    %77 = vector.broadcast %76 : vector<8x1xf32> to vector<8x8xf32>
    %78 = arith.subf %74, %77 : vector<8x8xf32>
    %79 = math.exp %78 : vector<8x8xf32>
    %cst_27 = arith.constant dense<0.000000e+00> : vector<8xf32>
    %80 = vector.multi_reduction <add>, %79, %cst_27 [1] : vector<8x8xf32> to vector<8xf32>
    %81 = vector.shape_cast %80 : vector<8xf32> to vector<8x1xf32>
    %82 = tpu.reciprocal %81 {approx = true} : vector<8x1xf32> -> vector<8x1xf32>
    %83 = vector.broadcast %82 : vector<8x1xf32> to vector<8x8xf32>
    %84 = arith.mulf %79, %83 : vector<8x8xf32>
    %85 = arith.truncf %84 : vector<8x8xf32> to vector<8x8xbf16>
    %86 = vector.extract_strided_slice %20 {offsets = [0, 16], sizes = [8, 8], strides = [1, 1]} : vector<8x32xbf16> to vector<8x8xbf16>
    %cst_28 = arith.constant dense<0.000000e+00> : vector<8x8xf32>
    %87 = tpu.matmul %85, %86, %cst_28 {dimension_numbers = #tpu.dot_dimension_numbers<[1], [0], [0], [1], [0, 0, 1, 1], [], []>} : vector<8x8xbf16>, vector<8x8xbf16>, vector<8x8xf32> -> vector<8x8xf32>
    %c0_29 = arith.constant 0 : index
    %c0_30 = arith.constant 0 : index
    %c16 = arith.constant 16 : index
    %88 = vector.load %arg16[%c0_29, %c0_30, %c16] : memref<1x8x32xf32, #tpu.memory_space<vmem>>, vector<1x8x8xf32>
    %89 = vector.shape_cast %88 : vector<1x8x8xf32> to vector<8x8xf32>
    %90 = vector.shape_cast %87 : vector<8x8xf32> to vector<1x8x8xf32>
    tpu.vector_store %arg16[%c0_29, %c0_30, %c16], %90 {strides = array<i32>} : memref<1x8x32xf32, #tpu.memory_space<vmem>>, vector<1x8x8xf32>,
    %91 = vector.extract_strided_slice %16 {offsets = [0, 24], sizes = [8, 8], strides = [1, 1]} : vector<8x32xbf16> to vector<8x8xbf16>
    %92 = vector.extract_strided_slice %18 {offsets = [0, 24], sizes = [8, 8], strides = [1, 1]} : vector<8x32xbf16> to vector<8x8xbf16>
    %cst_31 = arith.constant dense<0.000000e+00> : vector<8x8xf32>
    %93 = tpu.matmul %91, %92, %cst_31 {dimension_numbers = #tpu.dot_dimension_numbers<[1], [1], [0], [0], [0, 0, 1, 0], [], []>} : vector<8x8xbf16>, vector<8x8xbf16>, vector<8x8xf32> -> vector<8x8xf32>
    %cst_32 = arith.constant 0.353553385 : f32
    %94 = vector.broadcast %cst_32 : f32 to vector<8x8xf32>
    %95 = arith.mulf %93, %94 : vector<8x8xf32>
    %96 = vector.broadcast %21 : vector<1x8xf32> to vector<8x8xf32>
    %97 = arith.addf %95, %96 : vector<8x8xf32>
    %cst_33 = arith.constant dense<0xFF800000> : vector<8xf32>
    %98 = vector.multi_reduction <maximumf>, %97, %cst_33 [1] : vector<8x8xf32> to vector<8xf32>
    %99 = vector.shape_cast %98 : vector<8xf32> to vector<8x1xf32>
    %100 = vector.broadcast %99 : vector<8x1xf32> to vector<8x8xf32>
    %101 = arith.subf %97, %100 : vector<8x8xf32>
    %102 = math.exp %101 : vector<8x8xf32>
    %cst_34 = arith.constant dense<0.000000e+00> : vector<8xf32>
    %103 = vector.multi_reduction <add>, %102, %cst_34 [1] : vector<8x8xf32> to vector<8xf32>
    %104 = vector.shape_cast %103 : vector<8xf32> to vector<8x1xf32>
    %105 = tpu.reciprocal %104 {approx = true} : vector<8x1xf32> -> vector<8x1xf32>
    %106 = vector.broadcast %105 : vector<8x1xf32> to vector<8x8xf32>
    %107 = arith.mulf %102, %106 : vector<8x8xf32>
    %108 = arith.truncf %107 : vector<8x8xf32> to vector<8x8xbf16>
    %109 = vector.extract_strided_slice %20 {offsets = [0, 24], sizes = [8, 8], strides = [1, 1]} : vector<8x32xbf16> to vector<8x8xbf16>
    %cst_35 = arith.constant dense<0.000000e+00> : vector<8x8xf32>
    %110 = tpu.matmul %108, %109, %cst_35 {dimension_numbers = #tpu.dot_dimension_numbers<[1], [0], [0], [1], [0, 0, 1, 1], [], []>} : vector<8x8xbf16>, vector<8x8xbf16>, vector<8x8xf32> -> vector<8x8xf32>
    %c0_36 = arith.constant 0 : index
    %c0_37 = arith.constant 0 : index
    %c24 = arith.constant 24 : index
    %111 = vector.load %arg16[%c0_36, %c0_37, %c24] : memref<1x8x32xf32, #tpu.memory_space<vmem>>, vector<1x8x8xf32>
    %112 = vector.shape_cast %111 : vector<1x8x8xf32> to vector<8x8xf32>
    %113 = vector.shape_cast %110 : vector<8x8xf32> to vector<1x8x8xf32>
    tpu.vector_store %arg16[%c0_36, %c0_37, %c24], %113 {strides = array<i32>} : memref<1x8x32xf32, #tpu.memory_space<vmem>>, vector<1x8x8xf32>,
    %c0_38 = arith.constant 0 : index
    %c0_39 = arith.constant 0 : index
    %c0_40 = arith.constant 0 : index
    %114 = vector.load %arg16[%c0_38, %c0_39, %c0_40] : memref<1x8x32xf32, #tpu.memory_space<vmem>>, vector<1x8x32xf32>
    %115 = vector.shape_cast %114 : vector<1x8x32xf32> to vector<8x32xf32>
    %116 = arith.truncf %115 : vector<8x32xf32> to vector<8x32xbf16>
    %c0_41 = arith.constant 0 : index
    %c0_42 = arith.constant 0 : index
    %117 = vector.load %arg5[%c0_41, %c0_42] : memref<32x32xbf16, #tpu.memory_space<vmem>>, vector<32x32xbf16>
    %cst_43 = arith.constant dense<0.000000e+00> : vector<8x32xf32>
    %118 = tpu.matmul %116, %117, %cst_43 {dimension_numbers = #tpu.dot_dimension_numbers<[1], [0], [0], [1], [0, 0, 1, 1], [], []>} : vector<8x32xbf16>, vector<32x32xbf16>, vector<8x32xf32> -> vector<8x32xf32>
    %c0_44 = arith.constant 0 : index
    %c0_45 = arith.constant 0 : index
    %119 = vector.load %arg6[%c0_44, %c0_45] : memref<1x32xf32, #tpu.memory_space<vmem>>, vector<1x32xf32>
    %120 = vector.broadcast %119 : vector<1x32xf32> to vector<8x32xf32>
    %121 = arith.addf %118, %120 : vector<8x32xf32>
    %122 = arith.addf %1, %121 : vector<8x32xf32>
    %cst_46 = arith.constant dense<0.000000e+00> : vector<8xf32>
    %123 = vector.multi_reduction <add>, %122, %cst_46 [1] : vector<8x32xf32> to vector<8xf32>
    %124 = vector.shape_cast %123 : vector<8xf32> to vector<8x1xf32>
    %cst_47 = arith.constant 3.200000e+01 : f32
    %125 = vector.broadcast %cst_47 : f32 to vector<8x1xf32>
    %126 = arith.divf %124, %125 : vector<8x1xf32>
    %127 = vector.broadcast %126 : vector<8x1xf32> to vector<8x32xf32>
    %128 = arith.subf %122, %127 : vector<8x32xf32>
    %129 = arith.mulf %128, %128 : vector<8x32xf32>
    %cst_48 = arith.constant dense<0.000000e+00> : vector<8xf32>
    %130 = vector.multi_reduction <add>, %129, %cst_48 [1] : vector<8x32xf32> to vector<8xf32>
    %131 = vector.shape_cast %130 : vector<8xf32> to vector<8x1xf32>
    %cst_49 = arith.constant 3.200000e+01 : f32
    %132 = vector.broadcast %cst_49 : f32 to vector<8x1xf32>
    %133 = arith.divf %131, %132 : vector<8x1xf32>
    %134 = vector.broadcast %126 : vector<8x1xf32> to vector<8x32xf32>
    %135 = arith.subf %122, %134 : vector<8x32xf32>
    %cst_50 = arith.constant 9.99999974E-6 : f32
    %136 = vector.broadcast %cst_50 : f32 to vector<8x1xf32>
    %137 = arith.addf %133, %136 : vector<8x1xf32>
    %138 = math.rsqrt %137 : vector<8x1xf32>
    %139 = vector.broadcast %138 : vector<8x1xf32> to vector<8x32xf32>
    %140 = arith.mulf %135, %139 : vector<8x32xf32>
    %c0_51 = arith.constant 0 : index
    %c0_52 = arith.constant 0 : index
    %141 = vector.load %arg11[%c0_51, %c0_52] : memref<1x32xf32, #tpu.memory_space<vmem>>, vector<1x32xf32>
    %142 = vector.broadcast %141 : vector<1x32xf32> to vector<8x32xf32>
    %143 = arith.mulf %140, %142 : vector<8x32xf32>
    %c0_53 = arith.constant 0 : index
    %c0_54 = arith.constant 0 : index
    %144 = vector.load %arg12[%c0_53, %c0_54] : memref<1x32xf32, #tpu.memory_space<vmem>>, vector<1x32xf32>
    %145 = vector.broadcast %144 : vector<1x32xf32> to vector<8x32xf32>
    %146 = arith.addf %143, %145 : vector<8x32xf32>
    %147 = arith.truncf %146 : vector<8x32xf32> to vector<8x32xbf16>
    %c0_55 = arith.constant 0 : index
    %c0_56 = arith.constant 0 : index
    %148 = vector.load %arg7[%c0_55, %c0_56] : memref<32x64xbf16, #tpu.memory_space<vmem>>, vector<32x64xbf16>
    %cst_57 = arith.constant dense<0.000000e+00> : vector<8x64xf32>
    %149 = tpu.matmul %147, %148, %cst_57 {dimension_numbers = #tpu.dot_dimension_numbers<[1], [0], [0], [1], [0, 0, 1, 1], [], []>} : vector<8x32xbf16>, vector<32x64xbf16>, vector<8x64xf32> -> vector<8x64xf32>
    %c0_58 = arith.constant 0 : index
    %c0_59 = arith.constant 0 : index
    %150 = vector.load %arg8[%c0_58, %c0_59] : memref<1x64xf32, #tpu.memory_space<vmem>>, vector<1x64xf32>
    %151 = vector.broadcast %150 : vector<1x64xf32> to vector<8x64xf32>
    %152 = arith.addf %149, %151 : vector<8x64xf32>
    %cst_60 = arith.constant 0.000000e+00 : f32
    %153 = vector.broadcast %cst_60 : f32 to vector<8x64xf32>
    %154 = arith.maximumf %152, %153 : vector<8x64xf32>
    %155 = arith.truncf %154 : vector<8x64xf32> to vector<8x64xbf16>
    %c0_61 = arith.constant 0 : index
    %c0_62 = arith.constant 0 : index
    %156 = vector.load %arg9[%c0_61, %c0_62] : memref<64x32xbf16, #tpu.memory_space<vmem>>, vector<64x32xbf16>
    %cst_63 = arith.constant dense<0.000000e+00> : vector<8x32xf32>
    %157 = tpu.matmul %155, %156, %cst_63 {dimension_numbers = #tpu.dot_dimension_numbers<[1], [0], [0], [1], [0, 0, 1, 1], [], []>} : vector<8x64xbf16>, vector<64x32xbf16>, vector<8x32xf32> -> vector<8x32xf32>
    %158 = arith.addf %146, %157 : vector<8x32xf32>
    %c0_64 = arith.constant 0 : index
    %c0_65 = arith.constant 0 : index
    %159 = vector.load %arg10[%c0_64, %c0_65] : memref<1x32xf32, #tpu.memory_space<vmem>>, vector<1x32xf32>
    %160 = vector.broadcast %159 : vector<1x32xf32> to vector<8x32xf32>
    %161 = arith.addf %158, %160 : vector<8x32xf32>
    %cst_66 = arith.constant dense<0.000000e+00> : vector<8xf32>
    %162 = vector.multi_reduction <add>, %161, %cst_66 [1] : vector<8x32xf32> to vector<8xf32>
    %163 = vector.shape_cast %162 : vector<8xf32> to vector<8x1xf32>
    %cst_67 = arith.constant 3.200000e+01 : f32
    %164 = vector.broadcast %cst_67 : f32 to vector<8x1xf32>
    %165 = arith.divf %163, %164 : vector<8x1xf32>
    %166 = vector.broadcast %165 : vector<8x1xf32> to vector<8x32xf32>
    %167 = arith.subf %161, %166 : vector<8x32xf32>
    %168 = arith.mulf %167, %167 : vector<8x32xf32>
    %cst_68 = arith.constant dense<0.000000e+00> : vector<8xf32>
    %169 = vector.multi_reduction <add>, %168, %cst_68 [1] : vector<8x32xf32> to vector<8xf32>
    %170 = vector.shape_cast %169 : vector<8xf32> to vector<8x1xf32>
    %cst_69 = arith.constant 3.200000e+01 : f32
    %171 = vector.broadcast %cst_69 : f32 to vector<8x1xf32>
    %172 = arith.divf %170, %171 : vector<8x1xf32>
    %173 = vector.broadcast %165 : vector<8x1xf32> to vector<8x32xf32>
    %174 = arith.subf %161, %173 : vector<8x32xf32>
    %cst_70 = arith.constant 9.99999974E-6 : f32
    %175 = vector.broadcast %cst_70 : f32 to vector<8x1xf32>
    %176 = arith.addf %172, %175 : vector<8x1xf32>
    %177 = math.rsqrt %176 : vector<8x1xf32>
    %178 = vector.broadcast %177 : vector<8x1xf32> to vector<8x32xf32>
    %179 = arith.mulf %174, %178 : vector<8x32xf32>
    %c0_71 = arith.constant 0 : index
    %c0_72 = arith.constant 0 : index
    %180 = vector.load %arg13[%c0_71, %c0_72] : memref<1x32xf32, #tpu.memory_space<vmem>>, vector<1x32xf32>
    %181 = vector.broadcast %180 : vector<1x32xf32> to vector<8x32xf32>
    %182 = arith.mulf %179, %181 : vector<8x32xf32>
    %c0_73 = arith.constant 0 : index
    %c0_74 = arith.constant 0 : index
    %183 = vector.load %arg14[%c0_73, %c0_74] : memref<1x32xf32, #tpu.memory_space<vmem>>, vector<1x32xf32>
    %184 = vector.broadcast %183 : vector<1x32xf32> to vector<8x32xf32>
    %185 = arith.addf %182, %184 : vector<8x32xf32>
    %186 = vector.shape_cast %185 : vector<8x32xf32> to vector<1x8x32xf32>
    %c0_75 = arith.constant 0 : index
    %c0_76 = arith.constant 0 : index
    %c0_77 = arith.constant 0 : index
    %187 = vector.load %arg15[%c0_75, %c0_76, %c0_77] : memref<1x8x32xf32, #tpu.memory_space<vmem>>, vector<1x8x32xf32>
    tpu.vector_store %arg15[%c0_75, %c0_76, %c0_77], %186 {strides = array<i32>} : memref<1x8x32xf32, #tpu.memory_space<vmem>>, vector<1x8x32xf32>,
    return
  }
  func.func @transform_0(%arg0: i32) -> (i32, i32, i32) {
    %c0_i32 = arith.constant 0 : i32
    %c0_i32_0 = arith.constant 0 : i32
    %c0_i32_1 = arith.constant 0 : i32
    return %arg0, %c0_i32, %c0_i32_0 : i32, i32, i32
  }
  func.func @transform_1(%arg0: i32) -> (i32, i32, i32) {
    %c0_i32 = arith.constant 0 : i32
    %c0_i32_0 = arith.constant 0 : i32
    %c0_i32_1 = arith.constant 0 : i32
    return %arg0, %c0_i32, %c0_i32_0 : i32, i32, i32
  }
  func.func @transform_2(%arg0: i32) -> (i32, i32) {
    %c0_i32 = arith.constant 0 : i32
    %c0_i32_0 = arith.constant 0 : i32
    %c0_i32_1 = arith.constant 0 : i32
    return %c0_i32, %c0_i32_0 : i32, i32
  }
  func.func @transform_3(%arg0: i32) -> (i32, i32) {
    %c0_i32 = arith.constant 0 : i32
    %c0_i32_0 = arith.constant 0 : i32
    %c0_i32_1 = arith.constant 0 : i32
    return %c0_i32, %c0_i32_0 : i32, i32
  }
  func.func @transform_4(%arg0: i32) -> (i32, i32) {
    %c0_i32 = arith.constant 0 : i32
    %c0_i32_0 = arith.constant 0 : i32
    %c0_i32_1 = arith.constant 0 : i32
    return %c0_i32, %c0_i32_0 : i32, i32
  }
  func.func @transform_5(%arg0: i32) -> (i32, i32) {
    %c0_i32 = arith.constant 0 : i32
    %c0_i32_0 = arith.constant 0 : i32
    %c0_i32_1 = arith.constant 0 : i32
    return %c0_i32, %c0_i32_0 : i32, i32
  }
  func.func @transform_6(%arg0: i32) -> (i32, i32) {
    %c0_i32 = arith.constant 0 : i32
    %c0_i32_0 = arith.constant 0 : i32
    %c0_i32_1 = arith.constant 0 : i32
    return %c0_i32, %c0_i32_0 : i32, i32
  }
  func.func @transform_7(%arg0: i32) -> (i32, i32) {
    %c0_i32 = arith.constant 0 : i32
    %c0_i32_0 = arith.constant 0 : i32
    %c0_i32_1 = arith.constant 0 : i32
    return %c0_i32, %c0_i32_0 : i32, i32
  }
  func.func @transform_8(%arg0: i32) -> (i32, i32) {
    %c0_i32 = arith.constant 0 : i32
    %c0_i32_0 = arith.constant 0 : i32
    %c0_i32_1 = arith.constant 0 : i32
    return %c0_i32, %c0_i32_0 : i32, i32
  }
  func.func @transform_9(%arg0: i32) -> (i32, i32) {
    %c0_i32 = arith.constant 0 : i32
    %c0_i32_0 = arith.constant 0 : i32
    %c0_i32_1 = arith.constant 0 : i32
    return %c0_i32, %c0_i32_0 : i32, i32
  }
  func.func @transform_10(%arg0: i32) -> (i32, i32) {
    %c0_i32 = arith.constant 0 : i32
    %c0_i32_0 = arith.constant 0 : i32
    %c0_i32_1 = arith.constant 0 : i32
    return %c0_i32, %c0_i32_0 : i32, i32
  }
  func.func @transform_11(%arg0: i32) -> (i32, i32) {
    %c0_i32 = arith.constant 0 : i32
    %c0_i32_0 = arith.constant 0 : i32
    %c0_i32_1 = arith.constant 0 : i32
    return %c0_i32, %c0_i32_0 : i32, i32
  }
  func.func @transform_12(%arg0: i32) -> (i32, i32) {
    %c0_i32 = arith.constant 0 : i32
    %c0_i32_0 = arith.constant 0 : i32
    %c0_i32_1 = arith.constant 0 : i32
    return %c0_i32, %c0_i32_0 : i32, i32
  }
  func.func @transform_13(%arg0: i32) -> (i32, i32) {
    %c0_i32 = arith.constant 0 : i32
    %c0_i32_0 = arith.constant 0 : i32
    %c0_i32_1 = arith.constant 0 : i32
    return %c0_i32, %c0_i32_0 : i32, i32
  }
  func.func @transform_14(%arg0: i32) -> (i32, i32, i32) {
    %c0_i32 = arith.constant 0 : i32
    %c0_i32_0 = arith.constant 0 : i32
    %c0_i32_1 = arith.constant 0 : i32
    return %arg0, %c0_i32, %c0_i32_0 : i32, i32, i32
  }
}

module attributes {stable_mosaic.version = 11 : i64} {
  func.func @_head_kernel(%arg0: memref<2x32xf32, #tpu.memory_space<vmem>>, %arg1: memref<32x32xf32, #tpu.memory_space<vmem>>, %arg2: memref<1x32xf32, #tpu.memory_space<vmem>>, %arg3: memref<32x3xf32, #tpu.memory_space<vmem>>, %arg4: memref<1x3xf32, #tpu.memory_space<vmem>>, %arg5: memref<2x32xf32, #tpu.memory_space<vmem>>, %arg6: memref<2x3xf32, #tpu.memory_space<vmem>>) attributes {dimension_semantics = [], scalar_prefetch = 0 : i64, scratch_operands = 0 : i64, tpu.core_type = #tpu.core_type<tc>} {
    %c0 = arith.constant 0 : index
    %c0_0 = arith.constant 0 : index
    %0 = vector.load %arg0[%c0, %c0_0] : memref<2x32xf32, #tpu.memory_space<vmem>>, vector<2x32xf32>
    %c0_1 = arith.constant 0 : index
    %c0_2 = arith.constant 0 : index
    %1 = vector.load %arg1[%c0_1, %c0_2] : memref<32x32xf32, #tpu.memory_space<vmem>>, vector<32x32xf32>
    %cst = arith.constant dense<0.000000e+00> : vector<2x32xf32>
    %2 = tpu.matmul %0, %1, %cst {dimension_numbers = #tpu.dot_dimension_numbers<[1], [0], [0], [1], [0, 0, 1, 1], [], []>} : vector<2x32xf32>, vector<32x32xf32>, vector<2x32xf32> -> vector<2x32xf32>
    %c0_3 = arith.constant 0 : index
    %c0_4 = arith.constant 0 : index
    %3 = vector.load %arg2[%c0_3, %c0_4] : memref<1x32xf32, #tpu.memory_space<vmem>>, vector<1x32xf32>
    %4 = vector.broadcast %3 : vector<1x32xf32> to vector<2x32xf32>
    %5 = arith.addf %2, %4 : vector<2x32xf32>
    %c0_5 = arith.constant 0 : index
    %c0_6 = arith.constant 0 : index
    %6 = vector.load %arg5[%c0_5, %c0_6] : memref<2x32xf32, #tpu.memory_space<vmem>>, vector<2x32xf32>
    tpu.vector_store %arg5[%c0_5, %c0_6], %5 {strides = array<i32>} : memref<2x32xf32, #tpu.memory_space<vmem>>, vector<2x32xf32>,
    %c0_7 = arith.constant 0 : index
    %c0_8 = arith.constant 0 : index
    %7 = vector.load %arg3[%c0_7, %c0_8] : memref<32x3xf32, #tpu.memory_space<vmem>>, vector<32x3xf32>
    %cst_9 = arith.constant dense<0.000000e+00> : vector<2x3xf32>
    %8 = tpu.matmul %5, %7, %cst_9 {dimension_numbers = #tpu.dot_dimension_numbers<[1], [0], [0], [1], [0, 0, 1, 1], [], []>} : vector<2x32xf32>, vector<32x3xf32>, vector<2x3xf32> -> vector<2x3xf32>
    %c0_10 = arith.constant 0 : index
    %c0_11 = arith.constant 0 : index
    %9 = vector.load %arg4[%c0_10, %c0_11] : memref<1x3xf32, #tpu.memory_space<vmem>>, vector<1x3xf32>
    %10 = vector.broadcast %9 : vector<1x3xf32> to vector<2x3xf32>
    %11 = arith.addf %8, %10 : vector<2x3xf32>
    %c0_12 = arith.constant 0 : index
    %c0_13 = arith.constant 0 : index
    %12 = vector.load %arg6[%c0_12, %c0_13] : memref<2x3xf32, #tpu.memory_space<vmem>>, vector<2x3xf32>
    tpu.vector_store %arg6[%c0_12, %c0_13], %11 {strides = array<i32>} : memref<2x3xf32, #tpu.memory_space<vmem>>, vector<2x3xf32>,
    return
  }
}

</mosaic_0001>

<bundles_post_ra>
// kernel: forward.4
= control target key start
LH: loop header
LB: loop body
LE: loop exit
PB: predicated region body
PF: predicated region fallthrough
CT: control target
= control target key end

     0   :  { %s782_s13 = smov 0   ;;  %s836_s0 = inlined_call_operand.vmem [shape: bf16[2,8,14], index: 0, kind: input, shape index: {}]   ;;  %s837_s1 = inlined_call_operand.vmem [shape: f32[2,8,32], index: 1, kind: input, shape index: {}]   ;;  %s838_s2 = inlined_call_operand.vmem [shape: f32[2,8,3], index: 2, kind: input, shape index: {}]   ;;  %s839_s3 = inlined_call_operand.vmem [shape: bf16[14,96], index: 3, kind: input, shape index: {}]   ;;  %s840_s4 = inlined_call_operand.vmem [shape: f32[1,32], index: 4, kind: input, shape index: {}]   ;;  %s841_s5 = inlined_call_operand.vmem [shape: bf16[32,32], index: 5, kind: input, shape index: {}]   ;;  %s842_s6 = inlined_call_operand.vmem [shape: f32[1,32], index: 6, kind: input, shape index: {}]   ;;  %s843_s7 = inlined_call_operand.vmem [shape: f32[1,32], index: 7, kind: input, shape index: {}]   ;;  %s844_s8 = inlined_call_operand.vmem [shape: f32[1,32], index: 8, kind: input, shape index: {}]   ;;  %s845_s9 = inlined_call_operand.vmem [shape: f32[1,8,32], index: 9, kind: input, shape index: {}]   ;;  %s846_s10 = inlined_call_operand.vmem [shape: f32[2,8,32], index: 10, kind: output, shape index: {}]  }
   0x1 LB: > { %s650_s14 = sadd.s32 4294967295, %s717_s13   ;;  %p654_p0 = scmp.ge.s32.totalorder %s717_s13, 1  ;;  %s717_s13 = sphi %s782_s13, %s20_s13  }
   0x2   : > { %p329_p1 = scmp.lt.s32.totalorder %s717_s13, 3 }
   0x4   : > { %p330_p2 = pnand %p654_p0, %p329_p1 }
   0x5   : > { %vm402_vm0 = vcmask (!%p330_p2), 1046528   ;;  %v719_v0 = vmov (!%p330_p2), 0.0   ;;  %v708_v1 = vld [vmem:[%s839_s3] sm:$0x7f] (!%p330_p2)   ;;  %p373_p3 = scmp.lt.s32.totalorder (!%p330_p2), %s650_s14, 1  ;;  %vm720_vm1 = vmmov (!%p330_p2), 0  }
   0x6   : > { %333 = sbr.rel (%p330_p2) target bundleno = 462 (0x1ce), region = 60  ;;  %675 = vmatprep.subr.bf16.mxu0 (!%p330_p2), %v719_v0  ;;  %681 = vmatprep.subr.bf16.mxu1 (!%p330_p2), %v719_v0  ;;  %v721_v2 = vmov (!%p330_p2), 2   ;;  %v404_v3 = vsel (!%p330_p2), %vm402_vm0, %v708_v1, 0  ;;  %v722_v4 = vmov (!%p330_p2), 0   ;;  %vm398_vm2 = vcmask (!%p330_p2), 113664   ;;  %v709_v7 = vld [vmem:[%s841_s5] sm:$0xff] (!%p330_p2)  }
   0x7   : > { %677 = vmatprep.mubr.msk.bf16.mxu0 (!%p330_p2), %vm720_vm1, %v719_v0  ;;  %705 = vset.pattern.permute.xlu0 (!%p330_p2), %v721_v2  ;;  %v666_v8 = vld [vmem:[%s843_s7] ss:$0 sm:$0xff] (!%p330_p2)  ;;  %s723_s29 = smov (!%p330_p2), 32   ;;  %v724_v9 = vmov (!%p330_p2), 1   ;;  %v710_v10 = vld [vmem:[%s841_s5 + $0x8] sm:$0xff] (!%p330_p2)   ;;  %s725_s15 = smov (!%p330_p2), 64  }
   0x8   : > { %706 = vset.pattern.permute.xlu1 (!%p330_p2), %v722_v4  ;;  %685 = vmatprep.mubr.msk.bf16.mxu1 (!%p330_p2), %vm720_vm1, %v719_v0  ;;  %v661_v13 = vld [vmem:[%s840_s4] ss:$0 sm:$0xff] (!%p330_p2)  ;;  %vm479_vm3 = vcmask (!%p330_p2), 261120   ;;  %s726_s16 = smov (!%p330_p2), 96  }
   0x9   : > { %676 = vmatpush3.bf16.msra.mxu0 (!%p330_p2), %v404_v3  ;;  %682 = vmatpush3.bf16.msra.mxu1 (!%p330_p2), %v709_v7  ;;  %v662_v25 = vld [vmem:[%s842_s6] ss:$0 sm:$0xff] (!%p330_p2) }
   0xa   : > { %683 = vmatprep.subr.bf16.mxu1 (!%p330_p2), %v719_v0  ;;  %v667_v38 = vld [vmem:[%s844_s8] ss:$0 sm:$0xff] (!%p330_p2) }
   0xb   : > { %v570_v40 = vld [vmem:[%s845_s9] sm:$0xff] (!%p330_p2) }
   0xd   : > { %s848_s14 = smov (!%p373_p3, %s650_s14), 1  ;;  %684 = vmatpush3.bf16.msra.mxu1 %v710_v10 }
   0xe   : > { %s655_s17 = sshll.u32 %s848_s14, 2  ;;  %s793_s18 = sshll.u32 %s848_s14, 3 }
   0xf   : > { %s376_s21 = scalar_lea.vmem %s836_s0, %s655_s17  ;;  %s384_s24 = scalar_lea.vmem %s838_s2, %s793_s18 }
  0x10   : > { %v390_v5 = vld [vmem:[%s376_s21] sm:$0xf]  ;;  %s380_s20 = scalar_lea.vmem %s837_s1, %s793_s18 }
  0x11   : > { %v523_v6 = vld [vmem:[%s384_s24] sm:$0xff]  ;;  %678 = vmatmul.mubr.msk.bf16.vlgmr.msra.gmra.mrb[0].mxu0 %vm398_vm2, %v390_v5 }
  0x12   : > { %548 = vperm.xlu0 %705, %v523_v6   ;;  %526 = vperm.xlu1 %706, %v523_v6   ;;  %v530_v24 = vld [vmem:[%s380_s20] sm:$0xff] }
  0x16   : > { %543 = vrot.lane.b32.xlu0 %v666_v8, %s723_s29  ;;  %707 = vset.pattern.permute.xlu1 %v724_v9  ;;  %s388_s29 = scalar_lea.vmem %s846_s10, %s793_s18 }
  0x17   : > { %532 = vperm.xlu1 %707, %v523_v6  }
  0x91   : > { %v549_v11 = vpop.permute.xlu0 %548  ;;  %v527_v23 = vpop.permute.xlu1 %526 }
  0x95   : > { %v544_v12 = vpop.permute.xlu0 %543 }
  0x96   : > { %v533_v26 = vpop.permute.xlu1 %532 }
  0x97   : > { %v535_v28 = vmul.f32 %v533_v26, %v530_v24 }
  0xe4   : > { %v440_v14 = vpop.f32.mrb[0].mxu0 }
  0xe5   : > { %v453_v15 = vadd.f32 %v661_v13, %v440_v14  ;;  %v546_v16 = vadd.f32 %v544_v12, %v440_v14  ;;  %558 = vrot.lane.b32.xlu1 %v440_v14, %s725_s15  ;;  %v679_v17 = vpop.f32.mrb[1].mxu0 }
  0xe6   : > { %v443_v18 = vpop.f32.mrb[2].mxu0 }
  0xe7   : > { %v454_v19 = vmax.f32 %v453_v15, 0.0  ;;  %v680_v20 = vpop.f32.mrb[3].mxu0  ;;  %v551_v21 = vmul.f32 %v549_v11, %v546_v16 }
  0xe9   : > { %v455_v22 = vpack.c.bf16 %v454_v19, %v454_v19  ;;  %553 = vrot.lane.b32.xlu0 %v551_v21, %s726_s16 }
  0xeb   : > { %686 = vmatmul.mubr.msk.bf16.vlgmr.msra.gmra.mrb[0].mxu1 %vm479_vm3, %v455_v22 }
 0x157   : > { %v559_v37 = vpop.permute.xlu1 %558 }
 0x15b   : > { %v554_v35 = vpop.permute.xlu0 %553 }
 0x1be   : > { %v517_v27 = vpop.f32.mrb[0].mxu1 }
 0x1bf   : > { %v518_v29 = vadd.f32 %v662_v25, %v517_v27  ;;  %v687_v30 = vpop.f32.mrb[1].mxu1 }
 0x1c0   : > { %v520_v31 = vpop.f32.mrb[2].mxu1 }
 0x1c1   : > { %v529_v32 = vmul.f32 %v527_v23, %v518_v29  ;;  %v688_v33 = vpop.f32.mrb[3].mxu1 }
 0x1c3   : > { %v536_v34 = vadd.f32 %v535_v28, %v529_v32 }
 0x1c5   : > { %v556_v36 = vadd.f32 %v554_v35, %v536_v34 }
 0x1c7   : > { %v561_v39 = vadd.f32 %v559_v37, %v556_v36 }
 0x1c9   : > { %v569_v41 = vadd.f32 %v667_v38, %v561_v39 }
 0x1cb   : > { %v571_v42 = vadd.f32 %v570_v40, %v569_v41 }
 0x1cd   : > { %572 = vst.msk [vmem:[%s388_s29] sm:$0xff] %vm479_vm3, %v571_v42 }
 0x1ce PF: > { %s20_s13 = sadd.s32 1, %s717_s13  }
 0x1cf   : > { %p17_p4 = scmp.ge.s32.totalorder %s20_s13, 4  }
 0x1d1   :  { %19 = sbr.rel (!%p17_p4) target bundleno = 1 (0x1), region = 96 }

// kernel: forward.7
= control target key start
LH: loop header
LB: loop body
LE: loop exit
PB: predicated region body
PF: predicated region fallthrough
CT: control target
= control target key end

     0   :  { %12 = vsyncpa [#allocation3], 0  ;;  %v327_v3 = vmov 0.0|0.0   ;;  %vm328_vm0 = vmmov 0   ;;  %v329_v6 = vmov 0.0   ;;  %s424_s0 = inlined_call_operand.vmem [shape: f32[2,32], index: 0, kind: input, shape index: {}]   ;;  %s425_s1 = inlined_call_operand.vmem [shape: f32[32,32], index: 1, kind: input, shape index: {}]   ;;  %s426_s2 = inlined_call_operand.vmem [shape: f32[1,32], index: 2, kind: input, shape index: {}]   ;;  %s427_s3 = inlined_call_operand.vmem [shape: f32[32,3], index: 3, kind: input, shape index: {}]   ;;  %s428_s4 = inlined_call_operand.vmem [shape: f32[1,3], index: 4, kind: input, shape index: {}]   ;;  %s429_s5 = inlined_call_operand.hbm [shape: f32[2,32], index: 5, kind: output, shape index: {0}]   ;;  %s430_s6 = inlined_call_operand.hbm [shape: f32[2,3], index: 6, kind: output, shape index: {1}]  }
   0x1   :  { %v25_v0 = vld [vmem:[%s425_s1] sm:$0xff]  ;;  %v26_v1 = vld [vmem:[%s425_s1 + $0x8] sm:$0xff]  ;;  %v27_v2 = vld [vmem:[%s425_s1 + $0x10] sm:$0xff]  ;;  %262 = vmatprep.subr.bf16.mxu0 %v327_v3  ;;  %248 = vmatprep.mubr.msk.f32.mxu0 %vm328_vm0, %v329_v6 }
   0x2   :  { %v263_v4 = vpack.c.bf16 %v26_v1, %v25_v0  ;;  %v28_v5 = vld [vmem:[%s425_s1 + $0x18] sm:$0xff]  ;;  %v112_v7 = vld [vmem:[%s427_s3] sm:$0xff]  ;;  %268 = vmatprep.subr.bf16.mxu1 %v327_v3  ;;  %v113_v8 = vld [vmem:[%s427_s3 + $0x8] sm:$0xff]  ;;  %259 = vmatprep.mubr.msk.f32.mxu1 %vm328_vm0, %v329_v6 }
   0x3   :  { %13 = vsyncpa [#allocation5], 0  ;;  %v266_v9 = vpack.c.bf16 %v28_v5, %v27_v2  ;;  %v269_v10 = vpack.c.bf16 %v113_v8, %v112_v7  ;;  %v24_v11 = vld [vmem:[%s424_s0] sm:$0x3]  ;;  %vm36_vm1 = vcmask 261120   ;;  %v114_v12 = vld [vmem:[%s427_s3 + $0x10] sm:$0xff] }
   0x4   :  { %264 = vmatpush3.bf16.msra.mxu0 %v263_v4  ;;  %v115_v13 = vld [vmem:[%s427_s3 + $0x18] sm:$0xff]  ;;  %v226_v15 = vld [vmem:[%s426_s2] ss:$0 sm:$0xff]  ;;  %vm110_vm2 = vcmask 254976   ;;  %s330_s0 = smov [#allocation2]  }
   0x5   :  { %265 = vmatprep.subr.bf16.mxu0 %v327_v3  ;;  %270 = vmatpush3.bf16.msra.mxu1 %v269_v10  ;;  %v272_v14 = vpack.c.bf16 %v115_v13, %v114_v12  ;;  %s204_s16 = sshll.u32 %s330_s0, 4  ;;  %s205_s16 = int_to_ptr.vmem [resolvable:$true] %s204_s16 }
   0x6   :  { %271 = vmatprep.subr.bf16.mxu1 %v327_v3  ;;  %s279_s17 = scalar_lea.vmem %s205_s16, 32  ;;  %p284_p1 = scmp.lt.s32.totalorder %s205_s16, %s205_s16 }
   0x7   :  { %p280_p0 = scmp.ne.s32.totalorder %s205_s16, %s279_s17  ;;  %p285_p2 = scmp.lt.s32.totalorder %s279_s17, %s279_s17 }
   0x8   :  { %267 = vmatpush3.bf16.msra.mxu0 %v266_v9 }
   0x9   :  { %273 = vmatpush3.bf16.msra.mxu1 %v272_v14  ;;  %p286_p3 = por %p285_p2, %p284_p1 }
   0xb   :  { %249 = vmatmul.mubr.msk.f32.vlgmr.msra.gmra.mrb[0].mxu0 %vm36_vm1, %v24_v11  ;;  %p287_p4 = pnand %p286_p3, %p280_p0 }
  0xde   :  { %v106_v16 = vpop.f32.mrb[0].mxu0 }
  0xdf   :  { %v107_v17 = vadd.f32 %v226_v15, %v106_v16  ;;  %v250_v18 = vpop.f32.mrb[1].mxu0 }
  0xe1   :  { %260 = vmatmul.mubr.msk.f32.vlgmr.msra.gmra.mrb[0].mxu1 %vm36_vm1, %v107_v17  ;;  %111 = vst.msk [vmem:[#allocation2] sm:$0x3] %vm110_vm2, %v107_v17 }
  0xe2   :  { %290 = shalt.err (!%p287_p4)
}
  0xe3   :  { %s291_s2 = scalar_lea.hbm %s429_s5, 32 }
  0xe4   :  { %p292_p5 = scmp.ne.s32.totalorder %s429_s5, %s291_s2  ;;  %p295_p6 = scmp.lt.u32.totalorder %s291_s2, %s429_s5 }
  0xe6   :  { %p297_p7 = pnand %p295_p6, %p292_p5 }
  0xe8   :  { %300 = shalt.err (!%p297_p7)
}
  0xe9   :  { %207 = dma.vmem_to_hbm [thread:$0]  %s205_s16, 32, %s429_s5, [#allocation3]   ;;  %v228_v19 = vld [vmem:[%s428_s4] ss:$0 sm:$0xff]  ;;  %vm196_vm3 = vcmask 17408  }
  0xea   :  { %s331_s27 = smov [#allocation4]  }
  0xeb   :  { %s214_s28 = sshll.u32 %s331_s27, 4  ;;  %s215_s28 = int_to_ptr.vmem [resolvable:$true] %s214_s28 }
  0xec   :  { %s301_s29 = scalar_lea.vmem %s215_s28, 32  ;;  %p306_p9 = scmp.lt.s32.totalorder %s215_s28, %s215_s28 }
  0xed   :  { %p302_p8 = scmp.ne.s32.totalorder %s215_s28, %s301_s29  ;;  %p307_p10 = scmp.lt.s32.totalorder %s301_s29, %s301_s29 }
  0xef   :  { %p308_p11 = por %p307_p10, %p306_p9 }
  0xf1   :  { %p309_p12 = pnand %p308_p11, %p302_p8 }
 0x1b4   :  { %v192_v20 = vpop.f32.mrb[0].mxu1 }
 0x1b5   :  { %v193_v21 = vadd.f32 %v228_v19, %v192_v20  ;;  %v261_v22 = vpop.f32.mrb[1].mxu1 }
 0x1b7   :  { %197 = vst.msk [vmem:[#allocation4] sm:$0x3] %vm196_vm3, %v193_v21 }
 0x1b8   :  { %312 = shalt.err (!%p309_p12)
}
 0x1b9   :  { %s313_s7 = scalar_lea.hbm %s430_s6, 32 }
 0x1ba   :  { %p314_p13 = scmp.ne.s32.totalorder %s430_s6, %s313_s7  ;;  %p317_p0 = scmp.lt.u32.totalorder %s313_s7, %s430_s6 }
 0x1bc   :  { %p319_p1 = pnand %p317_p0, %p314_p13 }
 0x1be   :  { %322 = shalt.err (!%p319_p1)
}
 0x1bf   :  { %217 = dma.vmem_to_hbm [thread:$0]  %s215_s28, 32, %s430_s6, [#allocation5]  }
 0x1c0   :  { %323 = dma.done.wait [#allocation3], 32  }
 0x1c1   :  { %324 = vsyncadd [#allocation3], 4294967264 }
 0x1c2   :  { %325 = dma.done.wait [#allocation5], 32  }
 0x1c3   :  { %326 = vsyncadd [#allocation5], 4294967264 }
 0x1c4   :  { %224 = vsyncpa [#allocation3], 1 }
 0x1c5   :  { %225 = vsyncpa [#allocation5], 1 }

// kernel: forward.5
= control target key start
LH: loop header
LB: loop body
LE: loop exit
PB: predicated region body
PF: predicated region fallthrough
CT: control target
= control target key end

     0   :  { %s1675_s29 = smov 0   ;;  %s1851_s0 = inlined_call_operand.vmem [shape: f32[2,8,32], index: 0, kind: input, shape index: {}]   ;;  %s1852_s1 = inlined_call_operand.vmem [shape: f32[2,1,8], index: 1, kind: input, shape index: {}]   ;;  %s1853_s2 = inlined_call_operand.vmem [shape: bf16[32,96], index: 2, kind: input, shape index: {}]   ;;  %s1854_s3 = inlined_call_operand.vmem [shape: f32[1,96], index: 3, kind: input, shape index: {}]   ;;  %s1855_s4 = inlined_call_operand.vmem [shape: bf16[32,32], index: 4, kind: input, shape index: {}]   ;;  %s1856_s5 = inlined_call_operand.vmem [shape: f32[1,32], index: 5, kind: input, shape index: {}]   ;;  %s1857_s6 = inlined_call_operand.vmem [shape: bf16[32,64], index: 6, kind: input, shape index: {}]   ;;  %s1858_s7 = inlined_call_operand.vmem [shape: f32[1,64], index: 7, kind: input, shape index: {}]   ;;  %s1859_s8 = inlined_call_operand.vmem [shape: bf16[64,32], index: 8, kind: input, shape index: {}]   ;;  %s1860_s9 = inlined_call_operand.vmem [shape: f32[1,32], index: 9, kind: input, shape index: {}]   ;;  %s1861_s10 = inlined_call_operand.vmem [shape: f32[1,32], index: 10, kind: input, shape index: {}]   ;;  %s1862_s11 = inlined_call_operand.vmem [shape: f32[1,32], index: 11, kind: input, shape index: {}]   ;;  %s1863_s12 = inlined_call_operand.vmem [shape: f32[1,32], index: 12, kind: input, shape index: {}]   ;;  %s1864_s13 = inlined_call_operand.vmem [shape: f32[1,32], index: 13, kind: input, shape index: {}]   ;;  %s1865_s14 = inlined_call_operand.vmem [shape: f32[2,8,32], index: 14, kind: output, shape index: {}]  }
   0x1 LB: > { %s1368_s30 = sadd.s32 4294967295, %s1582_s29   ;;  %p1372_p0 = scmp.ge.s32.totalorder %s1582_s29, 1  ;;  %s1582_s29 = sphi %s1675_s29, %s24_s29  }
   0x2   : > { %p419_p1 = scmp.lt.s32.totalorder %s1582_s29, 3 }
   0x4   : > { %p420_p2 = pnand %p1372_p0, %p419_p1 }
   0x5   : > { %v1546_v0 = vld [vmem:[%s1853_s2] sm:$0xff] (!%p420_p2)   ;;  %v1584_v1 = vmov (!%p420_p2), 0.0   ;;  %v1547_v2 = vld [vmem:[%s1853_s2 + $0x8] sm:$0xff] (!%p420_p2)   ;;  %vm1585_vm0 = vmmov (!%p420_p2), 0   ;;  %p466_p3 = scmp.lt.s32.totalorder (!%p420_p2), %s1368_s30, 1  ;;  %vm503_vm1 = vcmask (!%p420_p2), 261120  }
   0x6   : > { %423 = sbr.rel (%p420_p2) target bundleno = 2568 (0xa08), region = 76  ;;  %1438 = vmatprep.subr.bf16.mxu0 (!%p420_p2), %v1584_v1  ;;  %1446 = vmatprep.subr.bf16.mxu1 (!%p420_p2), %v1584_v1  ;;  %v1375_v5 = vld [vmem:[%s1854_s3] ss:$0 sm:$0xff] (!%p420_p2)  ;;  %s1586_s25 = smov (!%p420_p2), 120   ;;  %vm552_vm2 = vcmask (!%p420_p2), 64512   ;;  %vm624_vm3 = vcmask (!%p420_p2), 1043456  }
   0x7   : > { %1439 = vmatpush3.bf16.msra.mxu0 (!%p420_p2), %v1546_v0  ;;  %1442 = vmatprep.mubr.msk.bf16.mxu0 (!%p420_p2), %vm1585_vm0, %v1584_v1  ;;  %s1587_s26 = smov (!%p420_p2), 96   ;;  %s1588_s27 = smov (!%p420_p2), 80   ;;  %vm785_vm4 = vcmask (!%p420_p2), 130112   ;;  %vm903_vm5 = vcmask (!%p420_p2), 195712   ;;  %vm1021_vm6 = vcmask (!%p420_p2), 261312   ;;  %vm1223_vm7 = vcmask (!%p420_p2), 523264  }
   0x8   : > { %1440 = vmatprep.subr.bf16.mxu0 (!%p420_p2), %v1584_v1  ;;  %1448 = vmatprep.mubr.msk.bf16.mxu1 (!%p420_p2), %vm1585_vm0, %v1584_v1  ;;  %s1589_s28 = smov (!%p420_p2), 88   ;;  %s1590_s15 = smov (!%p420_p2), 72  }
   0x9   : > { %s1591_s16 = smov (!%p420_p2), 112   ;;  %s1592_s17 = smov (!%p420_p2), 104  }
   0xa   : > { %s1594_s23 = smov (!%p420_p2), 64   ;;  %s1595_s24 = smov (!%p420_p2), 40  }
   0xb   : > { %1441 = vmatpush3.bf16.msra.mxu0 (!%p420_p2), %v1547_v2  ;;  %s1599_s18 = smov (!%p420_p2), 24  }
   0xc   : > { %1452 = vmatprep.subr.bf16.mxu0 (!%p420_p2), %v1584_v1 }
   0xd   : > { %s1867_s30 = smov (!%p466_p3, %s1368_s30), 1 }
   0xe   : > { %s1373_s19 = sshll.u32 %s1867_s30, 3  ;;  %s472_s21 = scalar_lea.vmem %s1852_s1, %s1867_s30 }
   0xf   : > { %s469_s22 = scalar_lea.vmem %s1851_s0, %s1373_s19  ;;  %v1380_v24 = vld [vmem:[%s472_s21] ss:$0 sm:$0xff] }
  0x10   : > { %v1705_v3 = vld [vmem:[%s469_s22] sm:$0xff]  ;;  %s1593_s22 = smov 56  }
  0x11   : > { %v479_v4 = vpack.c.bf16 %v1705_v3, %v1705_v3 }
  0x13   : > { %1443 = vmatmul.mubr.msk.bf16.vlgmr.msra.gmra.mrb[0].mxu0 %vm503_vm1, %v479_v4 }
  0x14   : > { %1454 = vmatprep.mubr.msk.bf16.mxu0 %vm1585_vm0, %v1584_v1 }
  0xe6   : > { %v541_v6 = vpop.f32.mrb[0].mxu0 }
  0xe7   : > { %v542_v7 = vadd.f32 %v1375_v5, %v541_v6  ;;  %v1444_v8 = vpop.f32.mrb[1].mxu0 }
  0xe8   : > { %v544_v9 = vpop.f32.mrb[2].mxu0 }
  0xe9   : > { %v1715_v10 = vpack.c.bf16 %v542_v7, %v542_v7  ;;  %v1445_v11 = vpop.f32.mrb[3].mxu0 }
  0xeb   : > { %669 = vrot.lane.b32.xlu1 %v1715_v10, %s1586_s25  ;;  %550 = vrot.lane.b32.xlu0 %v1715_v10, %s1587_s26  ;;  %s1596_s25 = smov 48   ;;  %s1597_s26 = smov 8  }
  0xef   : > { %789 = vrot.lane.b32.xlu1 %v1715_v10, %s1588_s27  ;;  %671 = vrot.lane.b32.xlu0 %v1715_v10, %s1589_s28 }
  0xf3   : > { %907 = vrot.lane.b32.xlu1 %v1715_v10, %s1590_s15  ;;  %787 = vrot.lane.b32.xlu0 %v1715_v10, %s1591_s16 }
  0xf7   : > { %905 = vrot.lane.b32.xlu0 %v1715_v10, %s1592_s17  ;;  %s1598_s17 = smov 16  }
 0x15d   : > { %v551_v12 = vpop.permute.xlu0 %550  ;;  %v670_v15 = vpop.permute.xlu1 %669 }
 0x15e   : > { %v557_v13 = vsel %vm552_vm2, %v551_v12, 0 }
 0x15f   : > { %1447 = vmatpush3.bf16.xpose.msra.mxu1 %v557_v13 }
 0x160   : > { %1458 = vmatprep.subr.bf16.mxu1 %v1584_v1 }
 0x161   : > { %v672_v14 = vpop.permute.xlu0 %671  ;;  %v790_v17 = vpop.permute.xlu1 %789 }
 0x162   : > { %v677_v16 = vsel %vm552_vm2, %v672_v14, 0  ;;  %v795_v18 = vsel %vm552_vm2, %v790_v17, 0 }
 0x165   : > { %v908_v19 = vpop.permute.xlu1 %907  ;;  %v788_v20 = vpop.permute.xlu0 %787 }
 0x166   : > { %1449 = vmatmul.mubr.msk.bf16.vlgmr.msra.gmra.mrb[0].mxu1 %vm552_vm2, %v1715_v10  ;;  %v913_v21 = vsel %vm552_vm2, %v908_v19, 0 }
 0x167   : > { %1459 = vmatpush3.bf16.xpose.msra.mxu1 %v677_v16  ;;  %1460 = vmatprep.mubr.msk.bf16.mxu1 %vm1585_vm0, %v1584_v1 }
 0x168   : > { %1470 = vmatprep.subr.bf16.mxu1 %v1584_v1 }
 0x169   : > { %v906_v22 = vpop.permute.xlu0 %905 }
 0x16e   : > { %1461 = vmatmul.mubr.msk.bf16.vlgmr.msra.gmra.mrb[4].mxu1 %vm552_vm2, %v670_v15 }
 0x16f   : > { %1471 = vmatpush3.bf16.xpose.msra.mxu1 %v795_v18  ;;  %1472 = vmatprep.mubr.msk.bf16.mxu1 %vm1585_vm0, %v1584_v1 }
 0x170   : > { %1482 = vmatprep.subr.bf16.mxu1 %v1584_v1 }
 0x176   : > { %1473 = vmatmul.mubr.msk.bf16.vlgmr.msra.gmra.mrb[8].mxu1 %vm552_vm2, %v788_v20 }
 0x177   : > { %1483 = vmatpush3.bf16.xpose.msra.mxu1 %v913_v21  ;;  %1484 = vmatprep.mubr.msk.bf16.mxu1 %vm1585_vm0, %v1584_v1 }
 0x178   : > { %1494 = vmatprep.subr.bf16.mxu1 %v1584_v1 }
 0x17e   : > { %1485 = vmatmul.mubr.msk.bf16.vlgmr.msra.gmra.mrb[12].mxu1 %vm552_vm2, %v906_v22 }
 0x17f   : > { %1498 = vmatprep.mubr.msk.bf16.mxu1 %vm1585_vm0, %v1584_v1 }
 0x239   : > { %v593_v23 = vpop.f32.mrb[0].mxu1 }
 0x23a   : > { %v599_v25 = vmul.f32 0.35355338, %v593_v23  ;;  %v1450_v26 = vpop.f32.mrb[1].mxu1 }
 0x23b   : > { %v596_v27 = vpop.f32.mrb[2].mxu1 }
 0x23c   : > { %v1451_v28 = vpop.f32.mrb[3].mxu1  ;;  %v606_v29 = vadd.f32 %v1380_v24, %v599_v25 }
 0x23e   : > { %v607_v30 = vsel %vm552_vm2, %v606_v29, -inf }
 0x23f   : > { %608 = vmax.xlane.f32.xlu1 %v607_v30 }
 0x241   : > { %v713_v31 = vpop.f32.mrb[4].mxu1 }
 0x242   : > { %v719_v32 = vmul.f32 0.35355338, %v713_v31  ;;  %v1462_v33 = vpop.f32.mrb[5].mxu1 }
 0x243   : > { %v716_v34 = vpop.f32.mrb[6].mxu1 }
 0x244   : > { %v1463_v35 = vpop.f32.mrb[7].mxu1  ;;  %v720_v36 = vadd.f32 %v1380_v24, %v719_v32 }
 0x246   : > { %v721_v37 = vsel %vm552_vm2, %v720_v36, -inf }
 0x247   : > { %722 = vmax.xlane.f32.xlu0 %v721_v37 }
 0x249   : > { %v831_v38 = vpop.f32.mrb[8].mxu1 }
 0x24a   : > { %v837_v39 = vmul.f32 0.35355338, %v831_v38  ;;  %v1474_v40 = vpop.f32.mrb[9].mxu1 }
 0x24b   : > { %v834_v41 = vpop.f32.mrb[10].mxu1 }
 0x24c   : > { %v1475_v42 = vpop.f32.mrb[11].mxu1  ;;  %v838_v43 = vadd.f32 %v1380_v24, %v837_v39 }
 0x24d   : > { %v1548_v42 = vld [vmem:[%s1855_s4] sm:$0xff]  }
 0x24e   : > { %v839_v44 = vsel %vm552_vm2, %v838_v43, -inf  ;;  %1495 = vmatpush3.bf16.msra.mxu1 %v1548_v42 }
 0x24f   : > { %840 = vmax.xlane.f32.xlu0 %v839_v44  ;;  %1496 = vmatprep.subr.bf16.mxu1 %v1584_v1 }
 0x251   : > { %v949_v45 = vpop.f32.mrb[12].mxu1 }
 0x252   : > { %v955_v46 = vmul.f32 0.35355338, %v949_v45  ;;  %v1486_v47 = vpop.f32.mrb[13].mxu1 }
 0x253   : > { %v952_v48 = vpop.f32.mrb[14].mxu1 }
 0x254   : > { %v1487_v49 = vpop.f32.mrb[15].mxu1  ;;  %v956_v50 = vadd.f32 %v1380_v24, %v955_v46 }
 0x256   : > { %v957_v51 = vsel %vm552_vm2, %v956_v50, -inf }
 0x257   : > { %958 = vmax.xlane.f32.xlu1 %v957_v51 }
 0x2cc   : > { %v609_v52 = vpop.xlane.xlu1 %608 }
 0x2cd   : > { %v610_v53 = vsub.f32 %v606_v29, %v609_v52 }
 0x2cf   : > { %v611_v54 = vmul.f32 1.442695, %v610_v53 }
 0x2d1   : > { %1556 = vpow2.f32 %v611_v54 }
 0x2d4   : > { %v723_v55 = vpop.xlane.xlu0 %722 }
 0x2d5   : > { %v724_v56 = vsub.f32 %v720_v36, %v723_v55 }
 0x2d7   : > { %v725_v57 = vmul.f32 1.442695, %v724_v56 }
 0x2d9   : > { %1558 = vpow2.f32 %v725_v57  ;;  %v1388_v57 = vld [vmem:[%s1856_s5] ss:$0 sm:$0xff] }
 0x2db   : > { %v1557_v58 = vpop.eup %1556 }
 0x2dc   : > { %v841_v59 = vpop.xlane.xlu0 %840  ;;  %v613_v60 = vsel %vm552_vm2, %v1557_v58, 0.0 }
 0x2dd   : > { %v842_v61 = vsub.f32 %v838_v43, %v841_v59  ;;  %614 = vadd.xlane.f32.xlu0 %v613_v60  ;;  %v1549_v43 = vld [vmem:[%s1855_s4 + $0x8] sm:$0xff]  }
 0x2de   : > { %1497 = vmatpush3.bf16.msra.mxu1 %v1549_v43 }
 0x2df   : > { %v843_v62 = vmul.f32 1.442695, %v842_v61  ;;  %1510 = vmatprep.subr.bf16.mxu1 %v1584_v1 }
 0x2e1   : > { %1560 = vpow2.f32 %v843_v62 }
 0x2e3   : > { %v1559_v63 = vpop.eup %1558 }
 0x2e4   : > { %v727_v0 = vsel %vm552_vm2, %v1559_v63, 0.0  ;;  %v959_v5 = vpop.xlane.xlu1 %958 }
 0x2e5   : > { %728 = vadd.xlane.f32.xlu1 %v727_v0  ;;  %v960_v6 = vsub.f32 %v956_v50, %v959_v5 }
 0x2e7   : > { %v961_v7 = vmul.f32 1.442695, %v960_v6 }
 0x2e9   : > { %1562 = vpow2.f32 %v961_v7 }
 0x2eb   : > { %v1561_v2 = vpop.eup %1560 }
 0x2ec   : > { %v845_v4 = vsel %vm552_vm2, %v1561_v2, 0.0 }
 0x2ed   : > { %846 = vadd.xlane.f32.xlu0 %v845_v4 }
 0x2f3   : > { %v1563_v8 = vpop.eup %1562 }
 0x2f4   : > { %v963_v9 = vsel %vm552_vm2, %v1563_v8, 0.0 }
 0x2f6   : > { %733 = vrot.lane.b32.xlu1 %v1715_v10, %s1593_s22  ;;  %s476_s22 = scalar_lea.vmem %s1865_s14, %s1373_s19 }
 0x303   : > { %619 = vrot.lane.b32.xlu0 %v1715_v10, %s1594_s23 }
 0x307   : > { %969 = vrot.lane.b32.xlu0 %v1715_v10, %s1595_s24 }
 0x31a   : > { %964 = vadd.xlane.f32.xlu1 %v963_v9  ;;  %v1552_v9 = vld [vmem:[%s1859_s8] sm:$0xff]  }
 0x32b   : > { %851 = vrot.lane.b32.xlu1 %v1715_v10, %s1596_s25 }
 0x36a   : > { %v615_v11 = vpop.xlane.xlu0 %614 }
 0x36b   : > { %1564 = vrcp.f32 %v615_v11  ;;  %v1553_v11 = vld [vmem:[%s1859_s8 + $0x8] sm:$0xff]  }
 0x372   : > { %v729_v12 = vpop.xlane.xlu1 %728 }
 0x373   : > { %1566 = vrcp.f32 %v729_v12 }
 0x375   : > { %v1565_v13 = vpop.eup %1564 }
 0x376   : > { %v617_v15 = vmul.f32 %v1565_v13, %v1557_v58  ;;  %v734_v18 = vpop.permute.xlu1 %733 }
 0x377   : > { %v739_v21 = vsel %vm624_vm3, %v734_v18, 0  ;;  %v1393_v18 = vld [vmem:[%s1862_s11] ss:$0 sm:$0xff] }
 0x378   : > { %v618_v19 = vpack.c.bf16 %v617_v15, %v617_v15 }
 0x37a   : > { %v847_v14 = vpop.xlane.xlu0 %846 }
 0x37b   : > { %1568 = vrcp.f32 %v847_v14 }
 0x37d   : > { %v1567_v20 = vpop.eup %1566 }
 0x37e   : > { %v620_v16 = vpop.permute.xlu0 %619  ;;  %v731_v10 = vmul.f32 %v1567_v20, %v1559_v63 }
 0x37f   : > { %v626_v17 = vsel %vm624_vm3, %v620_v16, 0  ;;  %v1392_v16 = vld [vmem:[%s1861_s10] ss:$0 sm:$0xff] }
 0x380   : > { %1453 = vmatpush3.bf16.msra.mxu0 %v626_v17  ;;  %v732_v22 = vpack.c.bf16 %v731_v10, %v731_v10  ;;  %v1554_v10 = vld [vmem:[%s1859_s8 + $0x10] sm:$0xff]  }
 0x381   : > { %1464 = vmatprep.subr.bf16.mxu0 %v1584_v1 }
 0x382   : > { %v970_v28 = vpop.permute.xlu0 %969 }
 0x383   : > { %1455 = vmatmul.mubr.msk.bf16.vlgmr.msra.gmra.mrb[4].mxu0 %vm552_vm2, %v618_v19  ;;  %v975_v30 = vsel %vm624_vm3, %v970_v28, 0 }
 0x384   : > { %1465 = vmatpush3.bf16.msra.mxu0 %v739_v21  ;;  %1466 = vmatprep.mubr.msk.bf16.mxu0 %vm1585_vm0, %v1584_v1 }
 0x385   : > { %1476 = vmatprep.subr.bf16.mxu0 %v1584_v1  ;;  %v1569_v23 = vpop.eup %1568 }
 0x386   : > { %v849_v25 = vmul.f32 %v1569_v23, %v1561_v2  ;;  %v1394_v23 = vld [vmem:[%s1858_s7] ss:$0 sm:$0xff] }
 0x388   : > { %v850_v29 = vpack.c.bf16 %v849_v25, %v849_v25 }
 0x38b   : > { %1467 = vmatmul.mubr.msk.bf16.vlgmr.msra.gmra.mrb[8].mxu0 %vm552_vm2, %v732_v22  ;;  %v1555_v22 = vld [vmem:[%s1859_s8 + $0x18] sm:$0xff]  }
 0x38c   : > { %1478 = vmatprep.mubr.msk.bf16.mxu0 %vm1585_vm0, %v1584_v1 }
 0x3a7   : > { %v965_v24 = vpop.xlane.xlu1 %964 }
 0x3a8   : > { %1570 = vrcp.f32 %v965_v24 }
 0x3ab   : > { %v852_v26 = vpop.permute.xlu1 %851 }
 0x3ac   : > { %v857_v27 = vsel %vm624_vm3, %v852_v26, 0 }
 0x3ad   : > { %1477 = vmatpush3.bf16.msra.mxu0 %v857_v27 }
 0x3ae   : > { %1488 = vmatprep.subr.bf16.mxu0 %v1584_v1 }
 0x3b0   : > { %1479 = vmatmul.mubr.msk.bf16.vlgmr.msra.gmra.mrb[12].mxu0 %vm552_vm2, %v850_v29 }
 0x3b1   : > { %1489 = vmatpush3.bf16.msra.mxu0 %v975_v30  ;;  %1490 = vmatprep.mubr.msk.bf16.mxu0 %vm1585_vm0, %v1584_v1 }
 0x3b2   : > { %v1571_v31 = vpop.eup %1570  ;;  %1502 = vmatprep.subr.bf16.mxu0 %v1584_v1 }
 0x3b3   : > { %v967_v32 = vmul.f32 %v1571_v31, %v1563_v8  ;;  %v1550_v8 = vld [vmem:[%s1857_s6] sm:$0xff]  }
 0x3b5   : > { %v968_v33 = vpack.c.bf16 %v967_v32, %v967_v32 }
 0x3b8   : > { %1491 = vmatmul.mubr.msk.bf16.vlgmr.msra.gmra.mrb[16].mxu0 %vm552_vm2, %v968_v33 }
 0x3b9   : > { %1506 = vmatprep.mubr.msk.bf16.mxu0 %vm1585_vm0, %v1584_v1  ;;  %1503 = vmatpush3.bf16.msra.mxu0 %v1550_v8 }
 0x3ba   : > { %1504 = vmatprep.subr.bf16.mxu0 %v1584_v1 }
 0x456   : > { %v662_v34 = vpop.f32.mrb[4].mxu0 }
 0x457   : > { %668 = vst.msk [vmem:[#allocation2] sm:$0xff] %vm552_vm2, %v662_v34  ;;  %v1456_v35 = vpop.f32.mrb[5].mxu0 }
 0x458   : > { %v665_v36 = vpop.f32.mrb[6].mxu0 }
 0x459   : > { %v1457_v37 = vpop.f32.mrb[7].mxu0 }
 0x45e   : > { %v775_v38 = vpop.f32.mrb[8].mxu0 }
 0x45f   : > { %782 = vrot.lane.b32.xlu1 %v775_v38, %s1597_s26  ;;  %v1468_v39 = vpop.f32.mrb[9].mxu0 }
 0x460   : > { %v778_v40 = vpop.f32.mrb[10].mxu0 }
 0x461   : > { %v1469_v41 = vpop.f32.mrb[11].mxu0 }
 0x483   : > { %v893_v44 = vpop.f32.mrb[12].mxu0 }
 0x484   : > { %900 = vrot.lane.b32.xlu0 %v893_v44, %s1598_s17  ;;  %v1480_v45 = vpop.f32.mrb[13].mxu0 }
 0x485   : > { %v896_v46 = vpop.f32.mrb[14].mxu0 }
 0x486   : > { %v1481_v47 = vpop.f32.mrb[15].mxu0 }
 0x487   : > { %v1404_v47 = vld [vmem:[%s1863_s12] ss:$0 sm:$0xff] }
 0x48b   : > { %v1011_v48 = vpop.f32.mrb[16].mxu0 }
 0x48c   : > { %1018 = vrot.lane.b32.xlu1 %v1011_v48, %s1599_s18  ;;  %v1492_v49 = vpop.f32.mrb[17].mxu0 }
 0x48d   : > { %v1014_v50 = vpop.f32.mrb[18].mxu0  ;;  %v1405_v49 = vld [vmem:[%s1864_s13] ss:$0 sm:$0xff] }
 0x48e   : > { %v1493_v51 = vpop.f32.mrb[19].mxu0 }
 0x4d1   : > { %v783_v52 = vpop.permute.xlu1 %782 }
 0x4d2   : > { %786 = vst.msk [vmem:[#allocation2] sm:$0xff] %vm785_vm4, %v783_v52 }
 0x4f6   : > { %v901_v53 = vpop.permute.xlu0 %900 }
 0x4f7   : > { %904 = vst.msk [vmem:[#allocation2] sm:$0xff] %vm903_vm5, %v901_v53 }
 0x4fe   : > { %v1019_v54 = vpop.permute.xlu1 %1018 }
 0x4ff   : > { %1022 = vst.msk [vmem:[#allocation2] sm:$0xff] %vm1021_vm6, %v1019_v54 }
 0x506   : > { %v1023_v55 = vld [vmem:[#allocation2] sm:$0xff] }
 0x507   : > { %v1024_v56 = vpack.c.bf16 %v1023_v55, %v1023_v55 }
 0x509   : > { %1499 = vmatmul.mubr.msk.bf16.vlgmr.msra.gmra.mrb[16].mxu1 %vm503_vm1, %v1024_v56 }
 0x50a   : > { %1518 = vmatprep.mubr.msk.bf16.mxu1 %vm1585_vm0, %v1584_v1  ;;  %1511 = vmatpush3.bf16.msra.mxu1 %v1552_v9 }
 0x50b   : > { %1512 = vmatprep.subr.bf16.mxu1 %v1584_v1 }
 0x50e   : > { %1513 = vmatpush3.bf16.msra.mxu1 %v1553_v11 }
 0x50f   : > { %1514 = vmatprep.subr.bf16.mxu1 %v1584_v1 }
 0x512   : > { %1515 = vmatpush3.bf16.msra.mxu1 %v1554_v10 }
 0x513   : > { %1516 = vmatprep.subr.bf16.mxu1 %v1584_v1  ;;  %v1403_v1 = vld [vmem:[%s1860_s9] ss:$0 sm:$0xff] }
 0x516   : > { %1517 = vmatpush3.bf16.msra.mxu1 %v1555_v22 }
 0x5dc   : > { %v1085_v58 = vpop.f32.mrb[16].mxu1 }
 0x5dd   : > { %v1086_v59 = vadd.f32 %v1388_v57, %v1085_v58  ;;  %v1500_v60 = vpop.f32.mrb[17].mxu1 }
 0x5de   : > { %v1088_v61 = vpop.f32.mrb[18].mxu1 }
 0x5df   : > { %v1501_v62 = vpop.f32.mrb[19].mxu1  ;;  %v1091_v63 = vadd.f32 %v1086_v59, %v1705_v3  ;;  %v1551_v3 = vld [vmem:[%s1857_s6 + $0x8] sm:$0xff]  }
 0x5e0   : > { %1505 = vmatpush3.bf16.msra.mxu0 %v1551_v3 }
 0x5e1   : > { %v1092_v0 = vsel %vm503_vm1, %v1091_v63, 0.0 }
 0x5e2   : > { %1093 = vadd.xlane.f32.xlu0 %v1092_v0 }
 0x66f   : > { %v1094_v2 = vpop.xlane.xlu0 %1093 }
 0x670   : > { %v1096_v4 = vmul.f32 0.03125, %v1094_v2 }
 0x672   : > { %v1097_v5 = vsub.f32 %v1091_v63, %v1096_v4 }
 0x674   : > { %v1098_v6 = vmul.f32 %v1097_v5, %v1097_v5 }
 0x676   : > { %v1099_v7 = vsel %vm503_vm1, %v1098_v6, 0.0 }
 0x677   : > { %1100 = vadd.xlane.f32.xlu1 %v1099_v7 }
 0x704   : > { %v1101_v12 = vpop.xlane.xlu1 %1100 }
 0x705   : > { %v1102_v13 = vmul.f32 0.03125, %v1101_v12 }
 0x707   : > { %v1103_v14 = vadd.f32 1e-05, %v1102_v13 }
 0x709   : > { %1572 = vrsqrt.f32 %v1103_v14 }
 0x713   : > { %v1573_v15 = vpop.eup %1572 }
 0x714   : > { %v1105_v17 = vmul.f32 %v1573_v15, %v1097_v5 }
 0x716   : > { %v1113_v19 = vmul.f32 %v1392_v16, %v1105_v17 }
 0x718   : > { %v1121_v20 = vadd.f32 %v1393_v18, %v1113_v19 }
 0x71a   : > { %v1122_v21 = vpack.c.bf16 %v1121_v20, %v1121_v20 }
 0x71c   : > { %1507 = vmatmul.mubr.msk.bf16.vlgmr.msra.gmra.mrb[20].mxu0 %vm503_vm1, %v1122_v21 }
 0x7ef   : > { %v1183_v24 = vpop.f32.mrb[20].mxu0 }
 0x7f0   : > { %v1184_v25 = vadd.f32 %v1394_v23, %v1183_v24  ;;  %v1508_v26 = vpop.f32.mrb[21].mxu0 }
 0x7f1   : > { %v1186_v27 = vpop.f32.mrb[22].mxu0 }
 0x7f2   : > { %v1189_v28 = vmax.f32 %v1184_v25, 0.0  ;;  %v1509_v29 = vpop.f32.mrb[23].mxu0 }
 0x7f4   : > { %v1190_v30 = vpack.c.bf16 %v1189_v28, %v1189_v28 }
 0x7f6   : > { %1519 = vmatmul.mubr.msk.bf16.vlgmr.msra.gmra.mrb[20].mxu1 %vm1223_vm7, %v1190_v30 }
 0x8c9   : > { %v1261_v31 = vpop.f32.mrb[20].mxu1 }
 0x8ca   : > { %v1267_v32 = vadd.f32 %v1261_v31, %v1121_v20  ;;  %v1520_v33 = vpop.f32.mrb[21].mxu1 }
 0x8cb   : > { %v1264_v34 = vpop.f32.mrb[22].mxu1 }
 0x8cc   : > { %v1521_v35 = vpop.f32.mrb[23].mxu1  ;;  %v1275_v36 = vadd.f32 %v1403_v1, %v1267_v32 }
 0x8ce   : > { %v1276_v37 = vsel %vm503_vm1, %v1275_v36, 0.0 }
 0x8cf   : > { %1277 = vadd.xlane.f32.xlu0 %v1276_v37 }
 0x95c   : > { %v1278_v38 = vpop.xlane.xlu0 %1277 }
 0x95d   : > { %v1279_v39 = vmul.f32 0.03125, %v1278_v38 }
 0x95f   : > { %v1280_v40 = vsub.f32 %v1275_v36, %v1279_v39 }
 0x961   : > { %v1281_v41 = vmul.f32 %v1280_v40, %v1280_v40 }
 0x963   : > { %v1282_v42 = vsel %vm503_vm1, %v1281_v41, 0.0 }
 0x964   : > { %1283 = vadd.xlane.f32.xlu0 %v1282_v42 }
 0x9f1   : > { %v1284_v43 = vpop.xlane.xlu0 %1283 }
 0x9f2   : > { %v1285_v44 = vmul.f32 0.03125, %v1284_v43 }
 0x9f4   : > { %v1286_v45 = vadd.f32 1e-05, %v1285_v44 }
 0x9f6   : > { %1574 = vrsqrt.f32 %v1286_v45 }
 0xa00   : > { %v1575_v46 = vpop.eup %1574 }
 0xa01   : > { %v1288_v48 = vmul.f32 %v1575_v46, %v1280_v40 }
 0xa03   : > { %v1296_v50 = vmul.f32 %v1404_v47, %v1288_v48 }
 0xa05   : > { %v1304_v51 = vadd.f32 %v1405_v49, %v1296_v50 }
 0xa07   : > { %1305 = vst.msk [vmem:[%s476_s22] sm:$0xff] %vm503_vm1, %v1304_v51 }
 0xa08 PF: > { %s24_s29 = sadd.s32 1, %s1582_s29  }
 0xa09   : > { %p21_p4 = scmp.ge.s32.totalorder %s24_s29, 4  }
 0xa0b   :  { %23 = sbr.rel (!%p21_p4) target bundleno = 1 (0x1), region = 109 }

</bundles_post_ra>
